<compile_context>
chip_gen: v5e
topology: v5e:2x2
jax: 0.10.0
libtpu: 0.0.40
codegen_flags: <defaults>
</compile_context>

<pallas_src>
import math

import jax
import jax.numpy as jnp
from jax import lax
from jax.experimental import pallas as pl
from jax.experimental.pallas import tpu as pltpu

NUM_HEADS = 4
LN_EPS = 1e-12


def _layer_norm(x, gamma, beta):
    mu = jnp.mean(x, axis=-1, keepdims=True)
    var = jnp.mean((x - mu) ** 2, axis=-1, keepdims=True)
    return (x - mu) * lax.rsqrt(var + LN_EPS) * gamma + beta


def _erf_poly(x):
    # Abramowitz & Stegun 7.1.26, |err| <= 1.5e-7.  Exact-GELU (erf) semantics
    # using only exp/div/select, which are guaranteed to lower under Mosaic.
    a1, a2, a3, a4, a5 = (0.254829592, -0.284496736, 1.421413741,
                          -1.453152027, 1.061405429)
    p = 0.3275911
    sgn = jnp.where(x >= 0.0, 1.0, -1.0).astype(x.dtype)
    ax = jnp.abs(x)
    t = 1.0 / (1.0 + p * ax)
    poly = ((((a5 * t + a4) * t + a3) * t + a2) * t + a1) * t
    return sgn * (1.0 - poly * jnp.exp(-ax * ax))


def _gelu_exact(x):
    return 0.5 * x * (1.0 + _erf_poly(x * 0.7071067811865476))


# --------------------------- fused encoder kernel ---------------------------
def gasa_stack_kernel(x_ref, bias_ref,
                      wqkv_ref, bqkv_ref, wao_ref, bao_ref, g1_ref, bt1_ref,
                      wi_ref, bi_ref, wo2_ref, bo2_ref, g2_ref, bt2_ref,
                      out_ref, h_ref):
    layer = pl.program_id(1)
    Bb, L, H = x_ref.shape
    nh = NUM_HEADS
    dh = H // nh
    scale = 1.0 / math.sqrt(dh)
    R = Bb * L

    # Load the batch block into the resident f32 activation scratch once.
    @pl.when(layer == 0)
    def _():
        h_ref[...] = x_ref[...].reshape(R, H).astype(jnp.float32)

    x = h_ref[...]                                  # [R, H] f32, layer input
    x_bf = x.astype(jnp.bfloat16)

    # --- BertSelfAttention: fused QKV projection over Bb*L rows (bf16 MXU) ---
    qkv = jnp.dot(x_bf, wqkv_ref[0],
                  preferred_element_type=jnp.float32) + bqkv_ref[0]
    q = (qkv[:, 0:H] * scale).reshape(Bb, L, H)     # fold 1/sqrt(dh) into q once
    k = qkv[:, H:2 * H].reshape(Bb, L, H)
    v = qkv[:, 2 * H:3 * H].reshape(Bb, L, H)

    wao = wao_ref[0]                                # [H, H] bf16
    bias = bias_ref[...].astype(jnp.float32)        # [Bb, L, L], hoisted once

    # Batched-over-Bb attention; static loop over heads (nh = 4).  No explicit
    # k transpose (einsum contracts the last axes) and no lane-axis concat of
    # heads: the self-output projection is accumulated per head on full rows.
    acc = jnp.zeros((R, H), jnp.float32)
    for h in range(nh):
        c0 = h * dh
        qh = q[:, :, c0:c0 + dh].astype(jnp.bfloat16)
        kh = k[:, :, c0:c0 + dh].astype(jnp.bfloat16)
        vh = v[:, :, c0:c0 + dh].astype(jnp.bfloat16)
        s = jnp.einsum('bld,bmd->blm', qh, kh,
                       preferred_element_type=jnp.float32) + bias   # [Bb,L,L]
        s = s - jnp.max(s, axis=-1, keepdims=True)
        p = jnp.exp(s)
        denom = jnp.sum(p, axis=-1, keepdims=True)
        inv = pl.reciprocal(denom, approx=True)     # EUP slot
        inv = inv * (2.0 - denom * inv)             # Newton step -> ~f32 exact
        p = p * inv
        ctx = jnp.einsum('blm,bmd->bld', p.astype(jnp.bfloat16), vh,
                         preferred_element_type=jnp.float32)        # [Bb,L,dh]
        acc = acc + jnp.dot(ctx.reshape(R, dh).astype(jnp.bfloat16),
                            wao[c0:c0 + dh, :],
                            preferred_element_type=jnp.float32)     # [R, H]

    # --- BertSelfOutput: bias + residual + LayerNorm (f32) ---
    att = acc + bao_ref[0]
    att = _layer_norm(att + x, g1_ref[0], bt1_ref[0])

    # --- BertIntermediate: dense + exact GELU ---
    inter = _gelu_exact(
        jnp.dot(att.astype(jnp.bfloat16), wi_ref[0],
                preferred_element_type=jnp.float32) + bi_ref[0])

    # --- BertOutput: dense + residual + LayerNorm ---
    out = jnp.dot(inter.astype(jnp.bfloat16), wo2_ref[0],
                  preferred_element_type=jnp.float32) + bo2_ref[0]
    out = _layer_norm(out + att, g2_ref[0], bt2_ref[0])

    h_ref[...] = out                                # carry to next layer

    @pl.when(layer == pl.num_programs(1) - 1)
    def _():
        out_ref[...] = out.reshape(Bb, L, H).astype(out_ref.dtype)


# ------------------------------- host wrapper --------------------------------
def _choose_batch_block(B, L, target_rows=256):
    """Batch elements per grid step: enough rows to feed the MXU (>=256 when
    possible) while keeping >=2 grid steps so both v7x TensorCores get work."""
    divisors = [d for d in range(1, B + 1) if B % d == 0]
    cand = [d for d in divisors if B // d >= 2] or divisors
    for d in cand:
        if d * L >= target_rows:
            return d
    return cand[-1]


def _vmem_limit_bytes(Bb, Lp, H, I):
    R = Bb * Lp
    weights = 2 * (3 * H * H + H * H + 2 * H * I)            # bf16 per layer
    smalls = 4 * (4 * H + 3 * H + 2 * I)                     # f32 biases / LN
    io_blocks = 4 * Bb * Lp * H * 2 + 2 * Bb * Lp * Lp       # x/out f32 + bias bf16
    work = 4 * (R * 3 * H + 4 * R * H + R * I) + 4 * Bb * 4 * Lp * Lp + 4 * R * H
    est = 2 * (weights + smalls) + 2 * io_blocks + work      # double buffering
    return int(min(128 * 1024 * 1024, max(32 * 1024 * 1024, 1.5 * est)))


def gasa_encoder_forward(img_embeds, img_masks, params, graph_sprels=None):
    """GASAEncoder.forward: extend_neg_masks + num_x_layers GraphLayers,
    fused into a single pallas_call."""
    B, L, H = img_embeds.shape
    NL = params["wqkv"].shape[0]
    I = params["wi"].shape[2]

    Lp = ((L + 7) // 8) * 8                          # sublane-align seq length
    x = img_embeds
    masks = img_masks.astype(jnp.float32)
    sprels = None if graph_sprels is None else graph_sprels[:, 0].astype(jnp.float32)
    if Lp != L:
        x = jnp.pad(x, ((0, 0), (0, Lp - L), (0, 0)))
        masks = jnp.pad(masks, ((0, 0), (0, Lp - L)))
        if sprels is not None:
            sprels = jnp.pad(sprels, ((0, 0), (0, Lp - L), (0, Lp - L)))

    # extend_neg_masks: (1 - mask) * -10000, broadcast over heads; + graph_sprels
    bias = (1.0 - masks) * -10000.0                  # [B, Lp]
    bias = jnp.broadcast_to(bias[:, None, :], (B, Lp, Lp))
    if sprels is not None:
        bias = bias + sprels
    bias = bias.astype(jnp.bfloat16)                 # halve O(B*L^2) HBM traffic

    Bb = _choose_batch_block(B, Lp)
    grid = (B // Bb, NL)

    def wspec(shape):                                # per-layer parameter spec
        return pl.BlockSpec((1,) + shape, lambda b, l: (l, 0, 0))

    in_specs = [
        pl.BlockSpec((Bb, Lp, H), lambda b, l: (b, 0, 0)),    # x (once per block)
        pl.BlockSpec((Bb, Lp, Lp), lambda b, l: (b, 0, 0)),   # attention bias
        wspec((H, 3 * H)), wspec((1, 3 * H)),                 # wqkv, bqkv
        wspec((H, H)), wspec((1, H)),                         # wao, bao
        wspec((1, H)), wspec((1, H)),                         # ln1 gamma, beta
        wspec((H, I)), wspec((1, I)),                         # wi, bi
        wspec((I, H)), wspec((1, H)),                         # wo2, bo2
        wspec((1, H)), wspec((1, H)),                         # ln2 gamma, beta
    ]

    out = pl.pallas_call(
        gasa_stack_kernel,
        out_shape=jax.ShapeDtypeStruct((B, Lp, H), img_embeds.dtype),
        grid_spec=pltpu.PrefetchScalarGridSpec(
            num_scalar_prefetch=0,
            grid=grid,
            in_specs=in_specs,
            out_specs=pl.BlockSpec((Bb, Lp, H), lambda b, l: (b, 0, 0)),
            scratch_shapes=[pltpu.VMEM((Bb * Lp, H), jnp.float32)],
        ),
        compiler_params=pltpu.CompilerParams(
            dimension_semantics=("parallel", "arbitrary"),
            vmem_limit_bytes=_vmem_limit_bytes(Bb, Lp, H, I),
        ),
    )(x, bias,
      params["wqkv"], params["bqkv"], params["wao"], params["bao"],
      params["g1"], params["bt1"],
      params["wi"], params["bi"], params["wo2"], params["bo2"],
      params["g2"], params["bt2"])
    return out[:, :L, :] if Lp != L else out


# -------------------- pure-JAX reference (same quantization) --------------------
_HI = jax.lax.Precision.HIGHEST


def _bf(a):
    return a.astype(jnp.bfloat16).astype(jnp.float32)


def _mm_ref(a, w):
    # mirror the kernel's MXU inputs: bf16 operands, f32 accumulation
    return jnp.dot(_bf(a), w.astype(jnp.float32), precision=_HI)


def _ref_layer(x, bias, p):
    B, L, H = x.shape
    nh, dh = NUM_HEADS, H // NUM_HEADS
    qkv = _mm_ref(x, p["wqkv"]) + p["bqkv"]
    q = qkv[..., 0:H] * (1.0 / math.sqrt(dh))
    k = qkv[..., H:2 * H]
    v = qkv[..., 2 * H:3 * H]
    q = q.reshape(B, L, nh, dh).transpose(0, 2, 1, 3)
    k = k.reshape(B, L, nh, dh).transpose(0, 2, 1, 3)
    v = v.reshape(B, L, nh, dh).transpose(0, 2, 1, 3)
    s = jnp.einsum("bhld,bhmd->bhlm", _bf(q), _bf(k), precision=_HI) + bias[:, None]
    pr = jax.nn.softmax(s, axis=-1)
    ctx = jnp.einsum("bhlm,bhmd->bhld", _bf(pr), _bf(v), precision=_HI)
    ctx = ctx.transpose(0, 2, 1, 3).reshape(B, L, H)
    att = _mm_ref(ctx, p["wao"]) + p["bao"]
    att = _layer_norm(att + x, p["g1"], p["bt1"])
    inter = jax.nn.gelu(_mm_ref(att, p["wi"]) + p["bi"], approximate=False)
    out = _mm_ref(inter, p["wo2"]) + p["bo2"]
    return _layer_norm(out + att, p["g2"], p["bt2"])


def gasa_encoder_ref(img_embeds, img_masks, params, graph_sprels=None):
    B, L, H = img_embeds.shape
    bias = (1.0 - img_masks.astype(jnp.float32)) * -10000.0
    bias = jnp.broadcast_to(bias[:, None, :], (B, L, L))
    if graph_sprels is not None:
        bias = bias + graph_sprels[:, 0].astype(jnp.float32)
    bias = bias.astype(jnp.bfloat16).astype(jnp.float32)   # mirror bf16 bias
    x = img_embeds.astype(jnp.float32)
    for l in range(params["wqkv"].shape[0]):
        x = _ref_layer(x, bias, {kk: vv[l] for kk, vv in params.items()})
    return x.astype(img_embeds.dtype)


# -------------------- deterministic stacked-parameter init --------------------
def init_stacked_params(key, num_layers, H, I):
    ks = jax.random.split(key, 12)
    NL = num_layers

    def w(k, *shape, scale=0.02):
        return (scale * jax.random.normal(k, shape, jnp.float32)).astype(jnp.bfloat16)

    def b(k, *shape, scale=0.02):
        return scale * jax.random.normal(k, shape, jnp.float32)

    return {
        "wqkv": w(ks[0], NL, H, 3 * H),
        "bqkv": b(ks[1], NL, 1, 3 * H),
        "wao":  w(ks[2], NL, H, H),
        "bao":  b(ks[3], NL, 1, H),
        "g1":   1.0 + b(ks[4], NL, 1, H, scale=0.05),
        "bt1":  b(ks[5], NL, 1, H),
        "wi":   w(ks[6], NL, H, I),
        "bi":   b(ks[7], NL, 1, I),
        "wo2":  w(ks[8], NL, I, H),
        "bo2":  b(ks[9], NL, 1, H),
        "g2":   1.0 + b(ks[10], NL, 1, H, scale=0.05),
        "bt2":  b(ks[11], NL, 1, H),
    }


if __name__ == "__main__":
    B, L, H, I = 4, 8, 128, 256        # batch, seq (regions), hidden, intermediate
    NUM_X_LAYERS = 2

    key = jax.random.PRNGKey(0)
    k_x, k_sprel, k_params = jax.random.split(key, 3)

    img_embeds = jax.random.normal(k_x, (B, L, H), jnp.float32)
    pos = jnp.arange(L)[None, :]
    lens = jnp.array([6, 8, 5, 7])[:, None]
    img_masks = (pos < lens).astype(jnp.float32)                 # [B, L]
    graph_sprels = 0.1 * jax.random.normal(k_sprel, (B, 1, L, L), jnp.float32)

    params = init_stacked_params(k_params, NUM_X_LAYERS, H, I)

    out = gasa_encoder_forward(img_embeds, img_masks, params,
                               graph_sprels=graph_sprels)
    out = jax.block_until_ready(out)

    ref = gasa_encoder_ref(img_embeds, img_masks, params,
                           graph_sprels=graph_sprels)
    assert out.shape == (B, L, H)
    err = float(jnp.max(jnp.abs(out - ref)))
    # NOTE: padded (fully-masked) rows match PyTorch (softmax over -1e4-biased
    # keys); downstream consumers must re-mask them.
    assert err < 3e-3, f"mismatch vs reference: {err}"

    print("KERNEL_OK")
</pallas_src>

<mosaic_0001>
module attributes {stable_mosaic.version = 11 : i64} {
  func.func @gasa_stack_kernel(%arg0: i32, %arg1: i32, %arg2: memref<2x8x128xf32, #tpu.memory_space<vmem>>, %arg3: memref<2x8x8xbf16, #tpu.memory_space<vmem>>, %arg4: memref<1x128x384xbf16, #tpu.memory_space<vmem>>, %arg5: memref<1x1x384xf32, #tpu.memory_space<vmem>>, %arg6: memref<1x128x128xbf16, #tpu.memory_space<vmem>>, %arg7: memref<1x1x128xf32, #tpu.memory_space<vmem>>, %arg8: memref<1x1x128xf32, #tpu.memory_space<vmem>>, %arg9: memref<1x1x128xf32, #tpu.memory_space<vmem>>, %arg10: memref<1x128x256xbf16, #tpu.memory_space<vmem>>, %arg11: memref<1x1x256xf32, #tpu.memory_space<vmem>>, %arg12: memref<1x256x128xbf16, #tpu.memory_space<vmem>>, %arg13: memref<1x1x128xf32, #tpu.memory_space<vmem>>, %arg14: memref<1x1x128xf32, #tpu.memory_space<vmem>>, %arg15: memref<1x1x128xf32, #tpu.memory_space<vmem>>, %arg16: memref<2x8x128xf32, #tpu.memory_space<vmem>>, %arg17: memref<16x128xf32, #tpu.memory_space<vmem>>) attributes {dimension_semantics = [#tpu.dimension_semantics<parallel>, #tpu.dimension_semantics<arbitrary>], iteration_bounds = array<i64: 2, 2>, scalar_prefetch = 0 : i64, scratch_operands = 1 : i64, tpu.core_type = #tpu.core_type<tc>, window_params = [{transform_indices = @transform_0, window_bounds = array<i64: 2, 8, 128>}, {transform_indices = @transform_1, window_bounds = array<i64: 2, 8, 8>}, {transform_indices = @transform_2, window_bounds = array<i64: 1, 128, 384>}, {transform_indices = @transform_3, window_bounds = array<i64: 1, 1, 384>}, {transform_indices = @transform_4, window_bounds = array<i64: 1, 128, 128>}, {transform_indices = @transform_5, window_bounds = array<i64: 1, 1, 128>}, {transform_indices = @transform_6, window_bounds = array<i64: 1, 1, 128>}, {transform_indices = @transform_7, window_bounds = array<i64: 1, 1, 128>}, {transform_indices = @transform_8, window_bounds = array<i64: 1, 128, 256>}, {transform_indices = @transform_9, window_bounds = array<i64: 1, 1, 256>}, {transform_indices = @transform_10, window_bounds = array<i64: 1, 256, 128>}, {transform_indices = @transform_11, window_bounds = array<i64: 1, 1, 128>}, {transform_indices = @transform_12, window_bounds = array<i64: 1, 1, 128>}, {transform_indices = @transform_13, window_bounds = array<i64: 1, 1, 128>}, {transform_indices = @transform_14, window_bounds = array<i64: 2, 8, 128>}]} {
    %c0_i32 = arith.constant 0 : i32
    %0 = arith.cmpi eq, %arg1, %c0_i32 : i32
    %1 = arith.extui %0 : i1 to i32
    %c0_i32_0 = arith.constant 0 : i32
    %2 = arith.cmpi ne, %1, %c0_i32_0 : i32
    scf.if %2 {
      %c0_98 = arith.constant 0 : index
      %c0_99 = arith.constant 0 : index
      %c0_100 = arith.constant 0 : index
      %260 = vector.load %arg2[%c0_98, %c0_99, %c0_100] : memref<2x8x128xf32, #tpu.memory_space<vmem>>, vector<2x8x128xf32>
      %261 = vector.shape_cast %260 : vector<2x8x128xf32> to vector<16x128xf32>
      %c0_101 = arith.constant 0 : index
      %c0_102 = arith.constant 0 : index
      %262 = vector.load %arg17[%c0_101, %c0_102] : memref<16x128xf32, #tpu.memory_space<vmem>>, vector<16x128xf32>
      tpu.vector_store %arg17[%c0_101, %c0_102], %261 {strides = array<i32>} : memref<16x128xf32, #tpu.memory_space<vmem>>, vector<16x128xf32>,
    } else {
    }
    %c0 = arith.constant 0 : index
    %c0_1 = arith.constant 0 : index
    %3 = vector.load %arg17[%c0, %c0_1] : memref<16x128xf32, #tpu.memory_space<vmem>>, vector<16x128xf32>
    %4 = arith.truncf %3 : vector<16x128xf32> to vector<16x128xbf16>
    %c0_2 = arith.constant 0 : index
    %c0_3 = arith.constant 0 : index
    %c0_4 = arith.constant 0 : index
    %5 = vector.load %arg4[%c0_2, %c0_3, %c0_4] : memref<1x128x384xbf16, #tpu.memory_space<vmem>>, vector<1x128x384xbf16>
    %6 = vector.shape_cast %5 : vector<1x128x384xbf16> to vector<128x384xbf16>
    %cst = arith.constant dense<0.000000e+00> : vector<16x384xf32>
    %7 = tpu.matmul %4, %6, %cst {dimension_numbers = #tpu.dot_dimension_numbers<[1], [0], [0], [1], [0, 0, 1, 1], [], []>} : vector<16x128xbf16>, vector<128x384xbf16>, vector<16x384xf32> -> vector<16x384xf32>
    %c0_5 = arith.constant 0 : index
    %c0_6 = arith.constant 0 : index
    %c0_7 = arith.constant 0 : index
    %8 = vector.load %arg5[%c0_5, %c0_6, %c0_7] : memref<1x1x384xf32, #tpu.memory_space<vmem>>, vector<1x1x384xf32>
    %9 = vector.shape_cast %8 : vector<1x1x384xf32> to vector<1x384xf32>
    %10 = vector.broadcast %9 : vector<1x384xf32> to vector<16x384xf32>
    %11 = arith.addf %7, %10 : vector<16x384xf32>
    %12 = vector.extract_strided_slice %11 {offsets = [0, 0], sizes = [16, 128], strides = [1, 1]} : vector<16x384xf32> to vector<16x128xf32>
    %cst_8 = arith.constant 0.176776692 : f32
    %13 = vector.broadcast %cst_8 : f32 to vector<16x128xf32>
    %14 = arith.mulf %12, %13 : vector<16x128xf32>
    %15 = vector.shape_cast %14 : vector<16x128xf32> to vector<2x8x128xf32>
    %16 = vector.extract_strided_slice %11 {offsets = [0, 128], sizes = [16, 128], strides = [1, 1]} : vector<16x384xf32> to vector<16x128xf32>
    %17 = vector.shape_cast %16 : vector<16x128xf32> to vector<2x8x128xf32>
    %18 = vector.extract_strided_slice %11 {offsets = [0, 256], sizes = [16, 128], strides = [1, 1]} : vector<16x384xf32> to vector<16x128xf32>
    %19 = vector.shape_cast %18 : vector<16x128xf32> to vector<2x8x128xf32>
    %c0_9 = arith.constant 0 : index
    %c0_10 = arith.constant 0 : index
    %c0_11 = arith.constant 0 : index
    %20 = vector.load %arg6[%c0_9, %c0_10, %c0_11] : memref<1x128x128xbf16, #tpu.memory_space<vmem>>, vector<1x128x128xbf16>
    %21 = vector.shape_cast %20 : vector<1x128x128xbf16> to vector<128x128xbf16>
    %c0_12 = arith.constant 0 : index
    %c0_13 = arith.constant 0 : index
    %c0_14 = arith.constant 0 : index
    %22 = vector.load %arg3[%c0_12, %c0_13, %c0_14] : memref<2x8x8xbf16, #tpu.memory_space<vmem>>, vector<2x8x8xbf16>
    %23 = arith.extf %22 : vector<2x8x8xbf16> to vector<2x8x8xf32>
    %cst_15 = arith.constant 0.000000e+00 : f32
    %24 = vector.broadcast %cst_15 : f32 to vector<16x128xf32>
    %25 = vector.extract_strided_slice %15 {offsets = [0, 0, 0], sizes = [2, 8, 32], strides = [1, 1, 1]} : vector<2x8x128xf32> to vector<2x8x32xf32>
    %26 = arith.truncf %25 : vector<2x8x32xf32> to vector<2x8x32xbf16>
    %27 = vector.extract_strided_slice %17 {offsets = [0, 0, 0], sizes = [2, 8, 32], strides = [1, 1, 1]} : vector<2x8x128xf32> to vector<2x8x32xf32>
    %28 = arith.truncf %27 : vector<2x8x32xf32> to vector<2x8x32xbf16>
    %29 = vector.extract_strided_slice %19 {offsets = [0, 0, 0], sizes = [2, 8, 32], strides = [1, 1, 1]} : vector<2x8x128xf32> to vector<2x8x32xf32>
    %30 = arith.truncf %29 : vector<2x8x32xf32> to vector<2x8x32xbf16>
    "tpu.trace_start"() <{level = 10 : i32, message = "bld,bmd->blm"}> : () -> ()
    %cst_16 = arith.constant dense<0.000000e+00> : vector<2x8x8xf32>
    %31 = tpu.matmul %26, %28, %cst_16 {dimension_numbers = #tpu.dot_dimension_numbers<[2], [2], [1], [1], [0, 0, 0, 1, 1, 1], [0], [0]>} : vector<2x8x32xbf16>, vector<2x8x32xbf16>, vector<2x8x8xf32> -> vector<2x8x8xf32>
    "tpu.trace_stop"() : () -> ()
    %32 = arith.addf %31, %23 : vector<2x8x8xf32>
    %cst_17 = arith.constant dense<0xFF800000> : vector<2x8xf32>
    %33 = vector.multi_reduction <maximumf>, %32, %cst_17 [2] : vector<2x8x8xf32> to vector<2x8xf32>
    %34 = vector.shape_cast %33 : vector<2x8xf32> to vector<2x8x1xf32>
    %35 = vector.broadcast %34 : vector<2x8x1xf32> to vector<2x8x8xf32>
    %36 = arith.subf %32, %35 : vector<2x8x8xf32>
    %37 = math.exp %36 : vector<2x8x8xf32>
    %cst_18 = arith.constant dense<0.000000e+00> : vector<2x8xf32>
    %38 = vector.multi_reduction <add>, %37, %cst_18 [2] : vector<2x8x8xf32> to vector<2x8xf32>
    %39 = vector.shape_cast %38 : vector<2x8xf32> to vector<2x8x1xf32>
    %40 = tpu.reciprocal %39 {approx = true} : vector<2x8x1xf32> -> vector<2x8x1xf32>
    %41 = arith.mulf %39, %40 : vector<2x8x1xf32>
    %cst_19 = arith.constant 2.000000e+00 : f32
    %42 = vector.broadcast %cst_19 : f32 to vector<2x8x1xf32>
    %43 = arith.subf %42, %41 : vector<2x8x1xf32>
    %44 = arith.mulf %40, %43 : vector<2x8x1xf32>
    %45 = vector.broadcast %44 : vector<2x8x1xf32> to vector<2x8x8xf32>
    %46 = arith.mulf %37, %45 : vector<2x8x8xf32>
    %47 = arith.truncf %46 : vector<2x8x8xf32> to vector<2x8x8xbf16>
    "tpu.trace_start"() <{level = 10 : i32, message = "blm,bmd->bld"}> : () -> ()
    %cst_20 = arith.constant dense<0.000000e+00> : vector<2x8x32xf32>
    %48 = tpu.matmul %47, %30, %cst_20 {dimension_numbers = #tpu.dot_dimension_numbers<[2], [1], [1], [2], [0, 0, 0, 1, 1, 2], [0], [0]>} : vector<2x8x8xbf16>, vector<2x8x32xbf16>, vector<2x8x32xf32> -> vector<2x8x32xf32>
    "tpu.trace_stop"() : () -> ()
    %49 = vector.shape_cast %48 : vector<2x8x32xf32> to vector<16x32xf32>
    %50 = arith.truncf %49 : vector<16x32xf32> to vector<16x32xbf16>
    %51 = vector.extract_strided_slice %21 {offsets = [0, 0], sizes = [32, 128], strides = [1, 1]} : vector<128x128xbf16> to vector<32x128xbf16>
    %cst_21 = arith.constant dense<0.000000e+00> : vector<16x128xf32>
    %52 = tpu.matmul %50, %51, %cst_21 {dimension_numbers = #tpu.dot_dimension_numbers<[1], [0], [0], [1], [0, 0, 1, 1], [], []>} : vector<16x32xbf16>, vector<32x128xbf16>, vector<16x128xf32> -> vector<16x128xf32>
    %53 = arith.addf %24, %52 : vector<16x128xf32>
    %54 = vector.extract_strided_slice %15 {offsets = [0, 0, 32], sizes = [2, 8, 32], strides = [1, 1, 1]} : vector<2x8x128xf32> to vector<2x8x32xf32>
    %55 = arith.truncf %54 : vector<2x8x32xf32> to vector<2x8x32xbf16>
    %56 = vector.extract_strided_slice %17 {offsets = [0, 0, 32], sizes = [2, 8, 32], strides = [1, 1, 1]} : vector<2x8x128xf32> to vector<2x8x32xf32>
    %57 = arith.truncf %56 : vector<2x8x32xf32> to vector<2x8x32xbf16>
    %58 = vector.extract_strided_slice %19 {offsets = [0, 0, 32], sizes = [2, 8, 32], strides = [1, 1, 1]} : vector<2x8x128xf32> to vector<2x8x32xf32>
    %59 = arith.truncf %58 : vector<2x8x32xf32> to vector<2x8x32xbf16>
    "tpu.trace_start"() <{level = 10 : i32, message = "bld,bmd->blm"}> : () -> ()
    %cst_22 = arith.constant dense<0.000000e+00> : vector<2x8x8xf32>
    %60 = tpu.matmul %55, %57, %cst_22 {dimension_numbers = #tpu.dot_dimension_numbers<[2], [2], [1], [1], [0, 0, 0, 1, 1, 1], [0], [0]>} : vector<2x8x32xbf16>, vector<2x8x32xbf16>, vector<2x8x8xf32> -> vector<2x8x8xf32>
    "tpu.trace_stop"() : () -> ()
    %61 = arith.addf %60, %23 : vector<2x8x8xf32>
    %cst_23 = arith.constant dense<0xFF800000> : vector<2x8xf32>
    %62 = vector.multi_reduction <maximumf>, %61, %cst_23 [2] : vector<2x8x8xf32> to vector<2x8xf32>
    %63 = vector.shape_cast %62 : vector<2x8xf32> to vector<2x8x1xf32>
    %64 = vector.broadcast %63 : vector<2x8x1xf32> to vector<2x8x8xf32>
    %65 = arith.subf %61, %64 : vector<2x8x8xf32>
    %66 = math.exp %65 : vector<2x8x8xf32>
    %cst_24 = arith.constant dense<0.000000e+00> : vector<2x8xf32>
    %67 = vector.multi_reduction <add>, %66, %cst_24 [2] : vector<2x8x8xf32> to vector<2x8xf32>
    %68 = vector.shape_cast %67 : vector<2x8xf32> to vector<2x8x1xf32>
    %69 = tpu.reciprocal %68 {approx = true} : vector<2x8x1xf32> -> vector<2x8x1xf32>
    %70 = arith.mulf %68, %69 : vector<2x8x1xf32>
    %cst_25 = arith.constant 2.000000e+00 : f32
    %71 = vector.broadcast %cst_25 : f32 to vector<2x8x1xf32>
    %72 = arith.subf %71, %70 : vector<2x8x1xf32>
    %73 = arith.mulf %69, %72 : vector<2x8x1xf32>
    %74 = vector.broadcast %73 : vector<2x8x1xf32> to vector<2x8x8xf32>
    %75 = arith.mulf %66, %74 : vector<2x8x8xf32>
    %76 = arith.truncf %75 : vector<2x8x8xf32> to vector<2x8x8xbf16>
    "tpu.trace_start"() <{level = 10 : i32, message = "blm,bmd->bld"}> : () -> ()
    %cst_26 = arith.constant dense<0.000000e+00> : vector<2x8x32xf32>
    %77 = tpu.matmul %76, %59, %cst_26 {dimension_numbers = #tpu.dot_dimension_numbers<[2], [1], [1], [2], [0, 0, 0, 1, 1, 2], [0], [0]>} : vector<2x8x8xbf16>, vector<2x8x32xbf16>, vector<2x8x32xf32> -> vector<2x8x32xf32>
    "tpu.trace_stop"() : () -> ()
    %78 = vector.shape_cast %77 : vector<2x8x32xf32> to vector<16x32xf32>
    %79 = arith.truncf %78 : vector<16x32xf32> to vector<16x32xbf16>
    %80 = vector.extract_strided_slice %21 {offsets = [32, 0], sizes = [32, 128], strides = [1, 1]} : vector<128x128xbf16> to vector<32x128xbf16>
    %cst_27 = arith.constant dense<0.000000e+00> : vector<16x128xf32>
    %81 = tpu.matmul %79, %80, %cst_27 {dimension_numbers = #tpu.dot_dimension_numbers<[1], [0], [0], [1], [0, 0, 1, 1], [], []>} : vector<16x32xbf16>, vector<32x128xbf16>, vector<16x128xf32> -> vector<16x128xf32>
    %82 = arith.addf %53, %81 : vector<16x128xf32>
    %83 = vector.extract_strided_slice %15 {offsets = [0, 0, 64], sizes = [2, 8, 32], strides = [1, 1, 1]} : vector<2x8x128xf32> to vector<2x8x32xf32>
    %84 = arith.truncf %83 : vector<2x8x32xf32> to vector<2x8x32xbf16>
    %85 = vector.extract_strided_slice %17 {offsets = [0, 0, 64], sizes = [2, 8, 32], strides = [1, 1, 1]} : vector<2x8x128xf32> to vector<2x8x32xf32>
    %86 = arith.truncf %85 : vector<2x8x32xf32> to vector<2x8x32xbf16>
    %87 = vector.extract_strided_slice %19 {offsets = [0, 0, 64], sizes = [2, 8, 32], strides = [1, 1, 1]} : vector<2x8x128xf32> to vector<2x8x32xf32>
    %88 = arith.truncf %87 : vector<2x8x32xf32> to vector<2x8x32xbf16>
    "tpu.trace_start"() <{level = 10 : i32, message = "bld,bmd->blm"}> : () -> ()
    %cst_28 = arith.constant dense<0.000000e+00> : vector<2x8x8xf32>
    %89 = tpu.matmul %84, %86, %cst_28 {dimension_numbers = #tpu.dot_dimension_numbers<[2], [2], [1], [1], [0, 0, 0, 1, 1, 1], [0], [0]>} : vector<2x8x32xbf16>, vector<2x8x32xbf16>, vector<2x8x8xf32> -> vector<2x8x8xf32>
    "tpu.trace_stop"() : () -> ()
    %90 = arith.addf %89, %23 : vector<2x8x8xf32>
    %cst_29 = arith.constant dense<0xFF800000> : vector<2x8xf32>
    %91 = vector.multi_reduction <maximumf>, %90, %cst_29 [2] : vector<2x8x8xf32> to vector<2x8xf32>
    %92 = vector.shape_cast %91 : vector<2x8xf32> to vector<2x8x1xf32>
    %93 = vector.broadcast %92 : vector<2x8x1xf32> to vector<2x8x8xf32>
    %94 = arith.subf %90, %93 : vector<2x8x8xf32>
    %95 = math.exp %94 : vector<2x8x8xf32>
    %cst_30 = arith.constant dense<0.000000e+00> : vector<2x8xf32>
    %96 = vector.multi_reduction <add>, %95, %cst_30 [2] : vector<2x8x8xf32> to vector<2x8xf32>
    %97 = vector.shape_cast %96 : vector<2x8xf32> to vector<2x8x1xf32>
    %98 = tpu.reciprocal %97 {approx = true} : vector<2x8x1xf32> -> vector<2x8x1xf32>
    %99 = arith.mulf %97, %98 : vector<2x8x1xf32>
    %cst_31 = arith.constant 2.000000e+00 : f32
    %100 = vector.broadcast %cst_31 : f32 to vector<2x8x1xf32>
    %101 = arith.subf %100, %99 : vector<2x8x1xf32>
    %102 = arith.mulf %98, %101 : vector<2x8x1xf32>
    %103 = vector.broadcast %102 : vector<2x8x1xf32> to vector<2x8x8xf32>
    %104 = arith.mulf %95, %103 : vector<2x8x8xf32>
    %105 = arith.truncf %104 : vector<2x8x8xf32> to vector<2x8x8xbf16>
    "tpu.trace_start"() <{level = 10 : i32, message = "blm,bmd->bld"}> : () -> ()
    %cst_32 = arith.constant dense<0.000000e+00> : vector<2x8x32xf32>
    %106 = tpu.matmul %105, %88, %cst_32 {dimension_numbers = #tpu.dot_dimension_numbers<[2], [1], [1], [2], [0, 0, 0, 1, 1, 2], [0], [0]>} : vector<2x8x8xbf16>, vector<2x8x32xbf16>, vector<2x8x32xf32> -> vector<2x8x32xf32>
    "tpu.trace_stop"() : () -> ()
    %107 = vector.shape_cast %106 : vector<2x8x32xf32> to vector<16x32xf32>
    %108 = arith.truncf %107 : vector<16x32xf32> to vector<16x32xbf16>
    %109 = vector.extract_strided_slice %21 {offsets = [64, 0], sizes = [32, 128], strides = [1, 1]} : vector<128x128xbf16> to vector<32x128xbf16>
    %cst_33 = arith.constant dense<0.000000e+00> : vector<16x128xf32>
    %110 = tpu.matmul %108, %109, %cst_33 {dimension_numbers = #tpu.dot_dimension_numbers<[1], [0], [0], [1], [0, 0, 1, 1], [], []>} : vector<16x32xbf16>, vector<32x128xbf16>, vector<16x128xf32> -> vector<16x128xf32>
    %111 = arith.addf %82, %110 : vector<16x128xf32>
    %112 = vector.extract_strided_slice %15 {offsets = [0, 0, 96], sizes = [2, 8, 32], strides = [1, 1, 1]} : vector<2x8x128xf32> to vector<2x8x32xf32>
    %113 = arith.truncf %112 : vector<2x8x32xf32> to vector<2x8x32xbf16>
    %114 = vector.extract_strided_slice %17 {offsets = [0, 0, 96], sizes = [2, 8, 32], strides = [1, 1, 1]} : vector<2x8x128xf32> to vector<2x8x32xf32>
    %115 = arith.truncf %114 : vector<2x8x32xf32> to vector<2x8x32xbf16>
    %116 = vector.extract_strided_slice %19 {offsets = [0, 0, 96], sizes = [2, 8, 32], strides = [1, 1, 1]} : vector<2x8x128xf32> to vector<2x8x32xf32>
    %117 = arith.truncf %116 : vector<2x8x32xf32> to vector<2x8x32xbf16>
    "tpu.trace_start"() <{level = 10 : i32, message = "bld,bmd->blm"}> : () -> ()
    %cst_34 = arith.constant dense<0.000000e+00> : vector<2x8x8xf32>
    %118 = tpu.matmul %113, %115, %cst_34 {dimension_numbers = #tpu.dot_dimension_numbers<[2], [2], [1], [1], [0, 0, 0, 1, 1, 1], [0], [0]>} : vector<2x8x32xbf16>, vector<2x8x32xbf16>, vector<2x8x8xf32> -> vector<2x8x8xf32>
    "tpu.trace_stop"() : () -> ()
    %119 = arith.addf %118, %23 : vector<2x8x8xf32>
    %cst_35 = arith.constant dense<0xFF800000> : vector<2x8xf32>
    %120 = vector.multi_reduction <maximumf>, %119, %cst_35 [2] : vector<2x8x8xf32> to vector<2x8xf32>
    %121 = vector.shape_cast %120 : vector<2x8xf32> to vector<2x8x1xf32>
    %122 = vector.broadcast %121 : vector<2x8x1xf32> to vector<2x8x8xf32>
    %123 = arith.subf %119, %122 : vector<2x8x8xf32>
    %124 = math.exp %123 : vector<2x8x8xf32>
    %cst_36 = arith.constant dense<0.000000e+00> : vector<2x8xf32>
    %125 = vector.multi_reduction <add>, %124, %cst_36 [2] : vector<2x8x8xf32> to vector<2x8xf32>
    %126 = vector.shape_cast %125 : vector<2x8xf32> to vector<2x8x1xf32>
    %127 = tpu.reciprocal %126 {approx = true} : vector<2x8x1xf32> -> vector<2x8x1xf32>
    %128 = arith.mulf %126, %127 : vector<2x8x1xf32>
    %cst_37 = arith.constant 2.000000e+00 : f32
    %129 = vector.broadcast %cst_37 : f32 to vector<2x8x1xf32>
    %130 = arith.subf %129, %128 : vector<2x8x1xf32>
    %131 = arith.mulf %127, %130 : vector<2x8x1xf32>
    %132 = vector.broadcast %131 : vector<2x8x1xf32> to vector<2x8x8xf32>
    %133 = arith.mulf %124, %132 : vector<2x8x8xf32>
    %134 = arith.truncf %133 : vector<2x8x8xf32> to vector<2x8x8xbf16>
    "tpu.trace_start"() <{level = 10 : i32, message = "blm,bmd->bld"}> : () -> ()
    %cst_38 = arith.constant dense<0.000000e+00> : vector<2x8x32xf32>
    %135 = tpu.matmul %134, %117, %cst_38 {dimension_numbers = #tpu.dot_dimension_numbers<[2], [1], [1], [2], [0, 0, 0, 1, 1, 2], [0], [0]>} : vector<2x8x8xbf16>, vector<2x8x32xbf16>, vector<2x8x32xf32> -> vector<2x8x32xf32>
    "tpu.trace_stop"() : () -> ()
    %136 = vector.shape_cast %135 : vector<2x8x32xf32> to vector<16x32xf32>
    %137 = arith.truncf %136 : vector<16x32xf32> to vector<16x32xbf16>
    %138 = vector.extract_strided_slice %21 {offsets = [96, 0], sizes = [32, 128], strides = [1, 1]} : vector<128x128xbf16> to vector<32x128xbf16>
    %cst_39 = arith.constant dense<0.000000e+00> : vector<16x128xf32>
    %139 = tpu.matmul %137, %138, %cst_39 {dimension_numbers = #tpu.dot_dimension_numbers<[1], [0], [0], [1], [0, 0, 1, 1], [], []>} : vector<16x32xbf16>, vector<32x128xbf16>, vector<16x128xf32> -> vector<16x128xf32>
    %140 = arith.addf %111, %139 : vector<16x128xf32>
    %c0_40 = arith.constant 0 : index
    %c0_41 = arith.constant 0 : index
    %c0_42 = arith.constant 0 : index
    %141 = vector.load %arg7[%c0_40, %c0_41, %c0_42] : memref<1x1x128xf32, #tpu.memory_space<vmem>>, vector<1x1x128xf32>
    %142 = vector.shape_cast %141 : vector<1x1x128xf32> to vector<1x128xf32>
    %143 = vector.broadcast %142 : vector<1x128xf32> to vector<16x128xf32>
    %144 = arith.addf %140, %143 : vector<16x128xf32>
    %145 = arith.addf %144, %3 : vector<16x128xf32>
    %c0_43 = arith.constant 0 : index
    %c0_44 = arith.constant 0 : index
    %c0_45 = arith.constant 0 : index
    %146 = vector.load %arg8[%c0_43, %c0_44, %c0_45] : memref<1x1x128xf32, #tpu.memory_space<vmem>>, vector<1x1x128xf32>
    %147 = vector.shape_cast %146 : vector<1x1x128xf32> to vector<1x128xf32>
    %c0_46 = arith.constant 0 : index
    %c0_47 = arith.constant 0 : index
    %c0_48 = arith.constant 0 : index
    %148 = vector.load %arg9[%c0_46, %c0_47, %c0_48] : memref<1x1x128xf32, #tpu.memory_space<vmem>>, vector<1x1x128xf32>
    %149 = vector.shape_cast %148 : vector<1x1x128xf32> to vector<1x128xf32>
    %cst_49 = arith.constant dense<0.000000e+00> : vector<16xf32>
    %150 = vector.multi_reduction <add>, %145, %cst_49 [1] : vector<16x128xf32> to vector<16xf32>
    %151 = vector.shape_cast %150 : vector<16xf32> to vector<16x1xf32>
    %cst_50 = arith.constant 1.280000e+02 : f32
    %152 = vector.broadcast %cst_50 : f32 to vector<16x1xf32>
    %153 = arith.divf %151, %152 : vector<16x1xf32>
    %154 = vector.broadcast %153 : vector<16x1xf32> to vector<16x128xf32>
    %155 = arith.subf %145, %154 : vector<16x128xf32>
    %156 = arith.mulf %155, %155 : vector<16x128xf32>
    %cst_51 = arith.constant dense<0.000000e+00> : vector<16xf32>
    %157 = vector.multi_reduction <add>, %156, %cst_51 [1] : vector<16x128xf32> to vector<16xf32>
    %158 = vector.shape_cast %157 : vector<16xf32> to vector<16x1xf32>
    %cst_52 = arith.constant 1.280000e+02 : f32
    %159 = vector.broadcast %cst_52 : f32 to vector<16x1xf32>
    %160 = arith.divf %158, %159 : vector<16x1xf32>
    %161 = vector.broadcast %153 : vector<16x1xf32> to vector<16x128xf32>
    %162 = arith.subf %145, %161 : vector<16x128xf32>
    %cst_53 = arith.constant 9.99999996E-13 : f32
    %163 = vector.broadcast %cst_53 : f32 to vector<16x1xf32>
    %164 = arith.addf %160, %163 : vector<16x1xf32>
    %165 = math.rsqrt %164 : vector<16x1xf32>
    %166 = vector.broadcast %165 : vector<16x1xf32> to vector<16x128xf32>
    %167 = arith.mulf %162, %166 : vector<16x128xf32>
    %168 = vector.broadcast %147 : vector<1x128xf32> to vector<16x128xf32>
    %169 = arith.mulf %167, %168 : vector<16x128xf32>
    %170 = vector.broadcast %149 : vector<1x128xf32> to vector<16x128xf32>
    %171 = arith.addf %169, %170 : vector<16x128xf32>
    %172 = arith.truncf %171 : vector<16x128xf32> to vector<16x128xbf16>
    %c0_54 = arith.constant 0 : index
    %c0_55 = arith.constant 0 : index
    %c0_56 = arith.constant 0 : index
    %173 = vector.load %arg10[%c0_54, %c0_55, %c0_56] : memref<1x128x256xbf16, #tpu.memory_space<vmem>>, vector<1x128x256xbf16>
    %174 = vector.shape_cast %173 : vector<1x128x256xbf16> to vector<128x256xbf16>
    %cst_57 = arith.constant dense<0.000000e+00> : vector<16x256xf32>
    %175 = tpu.matmul %172, %174, %cst_57 {dimension_numbers = #tpu.dot_dimension_numbers<[1], [0], [0], [1], [0, 0, 1, 1], [], []>} : vector<16x128xbf16>, vector<128x256xbf16>, vector<16x256xf32> -> vector<16x256xf32>
    %c0_58 = arith.constant 0 : index
    %c0_59 = arith.constant 0 : index
    %c0_60 = arith.constant 0 : index
    %176 = vector.load %arg11[%c0_58, %c0_59, %c0_60] : memref<1x1x256xf32, #tpu.memory_space<vmem>>, vector<1x1x256xf32>
    %177 = vector.shape_cast %176 : vector<1x1x256xf32> to vector<1x256xf32>
    %178 = vector.broadcast %177 : vector<1x256xf32> to vector<16x256xf32>
    %179 = arith.addf %175, %178 : vector<16x256xf32>
    %cst_61 = arith.constant 5.000000e-01 : f32
    %180 = vector.broadcast %cst_61 : f32 to vector<16x256xf32>
    %181 = arith.mulf %180, %179 : vector<16x256xf32>
    %cst_62 = arith.constant 0.707106769 : f32
    %182 = vector.broadcast %cst_62 : f32 to vector<16x256xf32>
    %183 = arith.mulf %179, %182 : vector<16x256xf32>
    %cst_63 = arith.constant 0.000000e+00 : f32
    %184 = vector.broadcast %cst_63 : f32 to vector<16x256xf32>
    %185 = arith.cmpf oge, %183, %184 : vector<16x256xf32>
    %cst_64 = arith.constant 1.000000e+00 : f32
    %cst_65 = arith.constant -1.000000e+00 : f32
    %186 = vector.broadcast %cst_64 : f32 to vector<16x256xf32>
    %187 = vector.broadcast %cst_65 : f32 to vector<16x256xf32>
    %188 = arith.select %185, %186, %187 : vector<16x256xi1>, vector<16x256xf32>
    %189 = math.absf %183 : vector<16x256xf32>
    %cst_66 = arith.constant 0.327591091 : f32
    %190 = vector.broadcast %cst_66 : f32 to vector<16x256xf32>
    %191 = arith.mulf %190, %189 : vector<16x256xf32>
    %cst_67 = arith.constant 1.000000e+00 : f32
    %192 = vector.broadcast %cst_67 : f32 to vector<16x256xf32>
    %193 = arith.addf %192, %191 : vector<16x256xf32>
    %cst_68 = arith.constant 1.000000e+00 : f32
    %194 = vector.broadcast %cst_68 : f32 to vector<16x256xf32>
    %195 = arith.divf %194, %193 : vector<16x256xf32>
    %cst_69 = arith.constant 1.06140542 : f32
    %196 = vector.broadcast %cst_69 : f32 to vector<16x256xf32>
    %197 = arith.mulf %196, %195 : vector<16x256xf32>
    %cst_70 = arith.constant -1.45315206 : f32
    %198 = vector.broadcast %cst_70 : f32 to vector<16x256xf32>
    %199 = arith.addf %197, %198 : vector<16x256xf32>
    %200 = arith.mulf %199, %195 : vector<16x256xf32>
    %cst_71 = arith.constant 1.42141378 : f32
    %201 = vector.broadcast %cst_71 : f32 to vector<16x256xf32>
    %202 = arith.addf %200, %201 : vector<16x256xf32>
    %203 = arith.mulf %202, %195 : vector<16x256xf32>
    %cst_72 = arith.constant -0.284496725 : f32
    %204 = vector.broadcast %cst_72 : f32 to vector<16x256xf32>
    %205 = arith.addf %203, %204 : vector<16x256xf32>
    %206 = arith.mulf %205, %195 : vector<16x256xf32>
    %cst_73 = arith.constant 0.254829586 : f32
    %207 = vector.broadcast %cst_73 : f32 to vector<16x256xf32>
    %208 = arith.addf %206, %207 : vector<16x256xf32>
    %209 = arith.mulf %208, %195 : vector<16x256xf32>
    %cst_74 = arith.constant 0.000000e+00 : f32
    %210 = vector.broadcast %cst_74 : f32 to vector<16x256xf32>
    %211 = arith.subf %210, %189 : vector<16x256xf32>
    %212 = arith.mulf %211, %189 : vector<16x256xf32>
    %213 = math.exp %212 : vector<16x256xf32>
    %214 = arith.mulf %209, %213 : vector<16x256xf32>
    %cst_75 = arith.constant 1.000000e+00 : f32
    %215 = vector.broadcast %cst_75 : f32 to vector<16x256xf32>
    %216 = arith.subf %215, %214 : vector<16x256xf32>
    %217 = arith.mulf %188, %216 : vector<16x256xf32>
    %cst_76 = arith.constant 1.000000e+00 : f32
    %218 = vector.broadcast %cst_76 : f32 to vector<16x256xf32>
    %219 = arith.addf %218, %217 : vector<16x256xf32>
    %220 = arith.mulf %181, %219 : vector<16x256xf32>
    %221 = arith.truncf %220 : vector<16x256xf32> to vector<16x256xbf16>
    %c0_77 = arith.constant 0 : index
    %c0_78 = arith.constant 0 : index
    %c0_79 = arith.constant 0 : index
    %222 = vector.load %arg12[%c0_77, %c0_78, %c0_79] : memref<1x256x128xbf16, #tpu.memory_space<vmem>>, vector<1x256x128xbf16>
    %223 = vector.shape_cast %222 : vector<1x256x128xbf16> to vector<256x128xbf16>
    %cst_80 = arith.constant dense<0.000000e+00> : vector<16x128xf32>
    %224 = tpu.matmul %221, %223, %cst_80 {dimension_numbers = #tpu.dot_dimension_numbers<[1], [0], [0], [1], [0, 0, 1, 1], [], []>} : vector<16x256xbf16>, vector<256x128xbf16>, vector<16x128xf32> -> vector<16x128xf32>
    %c0_81 = arith.constant 0 : index
    %c0_82 = arith.constant 0 : index
    %c0_83 = arith.constant 0 : index
    %225 = vector.load %arg13[%c0_81, %c0_82, %c0_83] : memref<1x1x128xf32, #tpu.memory_space<vmem>>, vector<1x1x128xf32>
    %226 = vector.shape_cast %225 : vector<1x1x128xf32> to vector<1x128xf32>
    %227 = vector.broadcast %226 : vector<1x128xf32> to vector<16x128xf32>
    %228 = arith.addf %224, %227 : vector<16x128xf32>
    %229 = arith.addf %228, %171 : vector<16x128xf32>
    %c0_84 = arith.constant 0 : index
    %c0_85 = arith.constant 0 : index
    %c0_86 = arith.constant 0 : index
    %230 = vector.load %arg14[%c0_84, %c0_85, %c0_86] : memref<1x1x128xf32, #tpu.memory_space<vmem>>, vector<1x1x128xf32>
    %231 = vector.shape_cast %230 : vector<1x1x128xf32> to vector<1x128xf32>
    %c0_87 = arith.constant 0 : index
    %c0_88 = arith.constant 0 : index
    %c0_89 = arith.constant 0 : index
    %232 = vector.load %arg15[%c0_87, %c0_88, %c0_89] : memref<1x1x128xf32, #tpu.memory_space<vmem>>, vector<1x1x128xf32>
    %233 = vector.shape_cast %232 : vector<1x1x128xf32> to vector<1x128xf32>
    %cst_90 = arith.constant dense<0.000000e+00> : vector<16xf32>
    %234 = vector.multi_reduction <add>, %229, %cst_90 [1] : vector<16x128xf32> to vector<16xf32>
    %235 = vector.shape_cast %234 : vector<16xf32> to vector<16x1xf32>
    %cst_91 = arith.constant 1.280000e+02 : f32
    %236 = vector.broadcast %cst_91 : f32 to vector<16x1xf32>
    %237 = arith.divf %235, %236 : vector<16x1xf32>
    %238 = vector.broadcast %237 : vector<16x1xf32> to vector<16x128xf32>
    %239 = arith.subf %229, %238 : vector<16x128xf32>
    %240 = arith.mulf %239, %239 : vector<16x128xf32>
    %cst_92 = arith.constant dense<0.000000e+00> : vector<16xf32>
    %241 = vector.multi_reduction <add>, %240, %cst_92 [1] : vector<16x128xf32> to vector<16xf32>
    %242 = vector.shape_cast %241 : vector<16xf32> to vector<16x1xf32>
    %cst_93 = arith.constant 1.280000e+02 : f32
    %243 = vector.broadcast %cst_93 : f32 to vector<16x1xf32>
    %244 = arith.divf %242, %243 : vector<16x1xf32>
    %245 = vector.broadcast %237 : vector<16x1xf32> to vector<16x128xf32>
    %246 = arith.subf %229, %245 : vector<16x128xf32>
    %cst_94 = arith.constant 9.99999996E-13 : f32
    %247 = vector.broadcast %cst_94 : f32 to vector<16x1xf32>
    %248 = arith.addf %244, %247 : vector<16x1xf32>
    %249 = math.rsqrt %248 : vector<16x1xf32>
    %250 = vector.broadcast %249 : vector<16x1xf32> to vector<16x128xf32>
    %251 = arith.mulf %246, %250 : vector<16x128xf32>
    %252 = vector.broadcast %231 : vector<1x128xf32> to vector<16x128xf32>
    %253 = arith.mulf %251, %252 : vector<16x128xf32>
    %254 = vector.broadcast %233 : vector<1x128xf32> to vector<16x128xf32>
    %255 = arith.addf %253, %254 : vector<16x128xf32>
    %c0_95 = arith.constant 0 : index
    %c0_96 = arith.constant 0 : index
    %256 = vector.load %arg17[%c0_95, %c0_96] : memref<16x128xf32, #tpu.memory_space<vmem>>, vector<16x128xf32>
    tpu.vector_store %arg17[%c0_95, %c0_96], %255 {strides = array<i32>} : memref<16x128xf32, #tpu.memory_space<vmem>>, vector<16x128xf32>,
    %c1_i32 = arith.constant 1 : i32
    %257 = arith.cmpi eq, %arg1, %c1_i32 : i32
    %258 = arith.extui %257 : i1 to i32
    %c0_i32_97 = arith.constant 0 : i32
    %259 = arith.cmpi ne, %258, %c0_i32_97 : i32
    scf.if %259 {
      %260 = vector.shape_cast %255 : vector<16x128xf32> to vector<2x8x128xf32>
      %c0_98 = arith.constant 0 : index
      %c0_99 = arith.constant 0 : index
      %c0_100 = arith.constant 0 : index
      %261 = vector.load %arg16[%c0_98, %c0_99, %c0_100] : memref<2x8x128xf32, #tpu.memory_space<vmem>>, vector<2x8x128xf32>
      tpu.vector_store %arg16[%c0_98, %c0_99, %c0_100], %260 {strides = array<i32>} : memref<2x8x128xf32, #tpu.memory_space<vmem>>, vector<2x8x128xf32>,
    } else {
    }
    return
  }
  func.func @transform_0(%arg0: i32, %arg1: i32) -> (i32, i32, i32) {
    %c0_i32 = arith.constant 0 : i32
    %c0_i32_0 = arith.constant 0 : i32
    %c0_i32_1 = arith.constant 0 : i32
    return %arg0, %c0_i32, %c0_i32_0 : i32, i32, i32
  }
  func.func @transform_1(%arg0: i32, %arg1: i32) -> (i32, i32, i32) {
    %c0_i32 = arith.constant 0 : i32
    %c0_i32_0 = arith.constant 0 : i32
    %c0_i32_1 = arith.constant 0 : i32
    return %arg0, %c0_i32, %c0_i32_0 : i32, i32, i32
  }
  func.func @transform_2(%arg0: i32, %arg1: i32) -> (i32, i32, i32) {
    %c0_i32 = arith.constant 0 : i32
    %c0_i32_0 = arith.constant 0 : i32
    %c0_i32_1 = arith.constant 0 : i32
    return %arg1, %c0_i32, %c0_i32_0 : i32, i32, i32
  }
  func.func @transform_3(%arg0: i32, %arg1: i32) -> (i32, i32, i32) {
    %c0_i32 = arith.constant 0 : i32
    %c0_i32_0 = arith.constant 0 : i32
    %c0_i32_1 = arith.constant 0 : i32
    return %arg1, %c0_i32, %c0_i32_0 : i32, i32, i32
  }
  func.func @transform_4(%arg0: i32, %arg1: i32) -> (i32, i32, i32) {
    %c0_i32 = arith.constant 0 : i32
    %c0_i32_0 = arith.constant 0 : i32
    %c0_i32_1 = arith.constant 0 : i32
    return %arg1, %c0_i32, %c0_i32_0 : i32, i32, i32
  }
  func.func @transform_5(%arg0: i32, %arg1: i32) -> (i32, i32, i32) {
    %c0_i32 = arith.constant 0 : i32
    %c0_i32_0 = arith.constant 0 : i32
    %c0_i32_1 = arith.constant 0 : i32
    return %arg1, %c0_i32, %c0_i32_0 : i32, i32, i32
  }
  func.func @transform_6(%arg0: i32, %arg1: i32) -> (i32, i32, i32) {
    %c0_i32 = arith.constant 0 : i32
    %c0_i32_0 = arith.constant 0 : i32
    %c0_i32_1 = arith.constant 0 : i32
    return %arg1, %c0_i32, %c0_i32_0 : i32, i32, i32
  }
  func.func @transform_7(%arg0: i32, %arg1: i32) -> (i32, i32, i32) {
    %c0_i32 = arith.constant 0 : i32
    %c0_i32_0 = arith.constant 0 : i32
    %c0_i32_1 = arith.constant 0 : i32
    return %arg1, %c0_i32, %c0_i32_0 : i32, i32, i32
  }
  func.func @transform_8(%arg0: i32, %arg1: i32) -> (i32, i32, i32) {
    %c0_i32 = arith.constant 0 : i32
    %c0_i32_0 = arith.constant 0 : i32
    %c0_i32_1 = arith.constant 0 : i32
    return %arg1, %c0_i32, %c0_i32_0 : i32, i32, i32
  }
  func.func @transform_9(%arg0: i32, %arg1: i32) -> (i32, i32, i32) {
    %c0_i32 = arith.constant 0 : i32
    %c0_i32_0 = arith.constant 0 : i32
    %c0_i32_1 = arith.constant 0 : i32
    return %arg1, %c0_i32, %c0_i32_0 : i32, i32, i32
  }
  func.func @transform_10(%arg0: i32, %arg1: i32) -> (i32, i32, i32) {
    %c0_i32 = arith.constant 0 : i32
    %c0_i32_0 = arith.constant 0 : i32
    %c0_i32_1 = arith.constant 0 : i32
    return %arg1, %c0_i32, %c0_i32_0 : i32, i32, i32
  }
  func.func @transform_11(%arg0: i32, %arg1: i32) -> (i32, i32, i32) {
    %c0_i32 = arith.constant 0 : i32
    %c0_i32_0 = arith.constant 0 : i32
    %c0_i32_1 = arith.constant 0 : i32
    return %arg1, %c0_i32, %c0_i32_0 : i32, i32, i32
  }
  func.func @transform_12(%arg0: i32, %arg1: i32) -> (i32, i32, i32) {
    %c0_i32 = arith.constant 0 : i32
    %c0_i32_0 = arith.constant 0 : i32
    %c0_i32_1 = arith.constant 0 : i32
    return %arg1, %c0_i32, %c0_i32_0 : i32, i32, i32
  }
  func.func @transform_13(%arg0: i32, %arg1: i32) -> (i32, i32, i32) {
    %c0_i32 = arith.constant 0 : i32
    %c0_i32_0 = arith.constant 0 : i32
    %c0_i32_1 = arith.constant 0 : i32
    return %arg1, %c0_i32, %c0_i32_0 : i32, i32, i32
  }
  func.func @transform_14(%arg0: i32, %arg1: i32) -> (i32, i32, i32) {
    %c0_i32 = arith.constant 0 : i32
    %c0_i32_0 = arith.constant 0 : i32
    %c0_i32_1 = arith.constant 0 : i32
    return %arg0, %c0_i32, %c0_i32_0 : i32, i32, i32
  }
}

</mosaic_0001>

<bundles_post_ra>
// kernel: tpu_custom_call.1
= control target key start
LH: loop header
LB: loop body
LE: loop exit
PB: predicated region body
PF: predicated region fallthrough
CT: control target
= control target key end

     0   :  { %s4517_s0 = inlined_call_operand.hbm [shape: f32[4,8,128], index: 0, kind: input, shape index: {}]   ;;  %s4518_s1 = inlined_call_operand.hbm [shape: bf16[4,8,8], index: 1, kind: input, shape index: {}]   ;;  %s4519_s2 = inlined_call_operand.hbm [shape: bf16[2,128,384], index: 2, kind: input, shape index: {}]   ;;  %s4520_s3 = inlined_call_operand.hbm [shape: f32[2,1,384], index: 3, kind: input, shape index: {}]   ;;  %s4521_s4 = inlined_call_operand.hbm [shape: bf16[2,128,128], index: 4, kind: input, shape index: {}]   ;;  %s4522_s5 = inlined_call_operand.vmem [shape: f32[2,1,128], index: 5, kind: input, shape index: {}]   ;;  %s4523_s6 = inlined_call_operand.hbm [shape: f32[2,1,128], index: 6, kind: input, shape index: {}]   ;;  %s4524_s7 = inlined_call_operand.hbm [shape: f32[2,1,128], index: 7, kind: input, shape index: {}]   ;;  %s4525_s8 = inlined_call_operand.hbm [shape: bf16[2,128,256], index: 8, kind: input, shape index: {}]   ;;  %s4526_s9 = inlined_call_operand.vmem [shape: f32[2,1,256], index: 9, kind: input, shape index: {}]   ;;  %s4527_s10 = inlined_call_operand.hbm [shape: bf16[2,256,128], index: 10, kind: input, shape index: {}]   ;;  %s4528_s11 = inlined_call_operand.vmem [shape: f32[2,1,128], index: 11, kind: input, shape index: {}]   ;;  %s4529_s12 = inlined_call_operand.vmem [shape: f32[2,1,128], index: 12, kind: input, shape index: {}]   ;;  %s4530_s13 = inlined_call_operand.vmem [shape: f32[2,1,128], index: 13, kind: input, shape index: {}]   ;;  %s4531_s14 = inlined_call_operand.hbm [shape: f32[4,8,128], index: 14, kind: output, shape index: {}]  }
   0x1   :  { %4562 = sst [smem:[#allocation44_spill]] %s4517_s0 }
   0x2   :  { %4563 = sst [smem:[#allocation45_spill]] %s4518_s1 }
   0x3   :  { %4564 = sst [smem:[#allocation46_spill]] %s4519_s2 }
   0x4   :  { %4565 = sst [smem:[#allocation47_spill]] %s4520_s3 }
   0x5   :  { %4566 = sst [smem:[#allocation48_spill]] %s4521_s4 }
   0x6   :  { %4567 = sst [smem:[#allocation49_spill]] %s4522_s5 }
   0x7   :  { %4568 = sst [smem:[#allocation50_spill]] %s4523_s6 }
   0x8   :  { %4569 = sst [smem:[#allocation51_spill]] %s4524_s7 }
   0x9   :  { %4570 = sst [smem:[#allocation52_spill]] %s4525_s8 }
   0xa   :  { %4571 = sst [smem:[#allocation53_spill]] %s4526_s9 }
   0xb   :  { %4572 = sst [smem:[#allocation54_spill]] %s4527_s10 }
   0xc   :  { %4573 = sst [smem:[#allocation55_spill]] %s4528_s11 }
   0xd   :  { %4574 = sst [smem:[#allocation56_spill]] %s4529_s12 }
   0xe   :  { %4575 = sst [smem:[#allocation57_spill]] %s4530_s13 }
   0xf   :  { %4576 = sst [smem:[#allocation58_spill]] %s4531_s14 }
  0x10   :  { %19 = vsyncpa [#allocation4], 0 }
  0x11   :  { %21 = vsyncpa [#allocation4 + $0x1], 0 }
  0x12   :  { %22 = vsyncpa [#allocation7], 0 }
  0x13   :  { %24 = vsyncpa [#allocation7 + $0x1], 0 }
  0x14   :  { %25 = vsyncpa [#allocation10], 0 }
  0x15   :  { %27 = vsyncpa [#allocation10 + $0x1], 0 }
  0x16   :  { %28 = vsyncpa [#allocation13], 0 }
  0x17   :  { %30 = vsyncpa [#allocation13 + $0x1], 0 }
  0x18   :  { %31 = vsyncpa [#allocation16], 0 }
  0x19   :  { %33 = vsyncpa [#allocation16 + $0x1], 0 }
  0x1a   :  { %34 = vsyncpa [#allocation5], 0 }
  0x1b   :  { %36 = vsyncpa [#allocation5 + $0x1], 0  ;;  %s3744_s29 = smov 0   ;;  %s3746_s30 = smov 0  }
  0x1c   :  { %s3748_s15 = smov 0   ;;  %s3750_s16 = smov 0  }
  0x1d   :  { %s3752_s17 = smov 0   ;;  %s3754_s18 = smov 0  }
  0x1e   :  { %s3756_s19 = smov 0   ;;  %s3758_s20 = smov 0  }
  0x1f   :  { %s3760_s21 = smov 0   ;;  %s3762_s22 = smov 0  }
  0x20   :  { %s3764_s23 = smov 0  }
  0x21 LB: > { %4577 = sst [smem:[#allocation26_spill]] %s3618_s30  ;;  %s3800_s24 = sadd.s32 4294967295, %s3654_s23   ;;  %s3654_s23 = sphi %s3764_s23, %s42_s23   ;;  %s3650_s22 = sphi %s3762_s22, %s4654_s22   ;;  %s3646_s21 = sphi %s3760_s21, %s4653_s21   ;;  %s3642_s20 = sphi %s3758_s20, %s4652_s20   ;;  %s3638_s19 = sphi %s3756_s19, %s4651_s19   ;;  %s3634_s18 = sphi %s3754_s18, %s4650_s18   ;;  %s3630_s17 = sphi %s3752_s17, %s4649_s17   ;;  %s3626_s16 = sphi %s3750_s16, %s4648_s16   ;;  %s3622_s15 = sphi %s3748_s15, %s4647_s15   ;;  %s3618_s30 = sphi %s3746_s30, %s4646_s30   ;;  %s3614_s29 = sphi %s3744_s29, %s4645_s29  }
  0x22   : > { %4578 = sst [smem:[#allocation27_spill]] %s3622_s15  ;;  %s2633_s25 = sadd.s32 4294967294, %s3654_s23  }
  0x23   : > { %4579 = sst [smem:[#allocation28_spill]] %s3626_s16  ;;  %s4533_s26 = sadd.s32 1, %s3646_s21 }
  0x24   : > { %4580 = sst [smem:[#allocation29_spill]] %s3630_s17  ;;  %s54_s27 = sadd.s32 1, %s3650_s22 }
  0x25   : > { %4581 = sst [smem:[#allocation30_spill]] %s3634_s18  ;;  %p3807_p0 = scmp.ge.s32.totalorder %s4533_s26, 2 }
  0x26   : > { %4582 = sst [smem:[#allocation31_spill]] %s3638_s19  ;;  %s61_s14 = sadd.s32 1, %s3634_s18 }
  0x27   : > { %4583 = sst [smem:[#allocation32_spill]] %s3642_s20  ;;  %p68_p1 = scmp.ne.s32.totalorder %s3634_s18, %s3630_s17 }
  0x28   : > { %4584 = sst [smem:[#allocation33_spill]] %s3646_s21  ;;  %p69_p2 = scmp.eq.s32.totalorder %s3654_s23, 0 }
  0x29   : > { %4585 = sst [smem:[#allocation34_spill]] %s3650_s22  ;;  %s4656_s27 = smov (!%p3807_p0, %s54_s27), %s3650_s22 }
  0x2a   : > { %4586 = sst [smem:[#allocation35_spill]] %s3654_s23  ;;  %p3820_p3 = por %p69_p2, %p68_p1 }
  0x2b   : > { %p74_p4 = scmp.ne.s32.totalorder %s3630_s17, %s3626_s16  ;;  %p56_p5 = scmp.ge.s32.totalorder %s4656_s27, 2 }
  0x2c   : > { %p75_p6 = scmp.eq.s32.totalorder %s3800_s24, 0  ;;  %p436_p7 = scmp.eq.s32.totalorder %s3800_s24, 3 }
  0x2d   : > { %p442_p8 = scmp.eq.s32.totalorder %s2633_s25, 3  ;;  %s4658_s27 = smov (%p56_p5, %s4656_s27), 0 }
  0x2e   : > { %4589 = sst [smem:[#allocation36_spill]] %s4658_s27  ;;  %p3832_p9 = por %p75_p6, %p74_p4 }
  0x2f   : > { %p3836_p10 = por %p436_p7, %p68_p1  ;;  %s58_s12 = ssub.s32 %s3650_s22, %s4658_s27 }
  0x30   : > { %s4590_s26 = scalar_select %p3832_p9, 1, 0 }
  0x31   : > { %s4592_s13 = scalar_select %p3836_p10, 1, 0 }
  0x32   : > { %4591 = sst [smem:[#allocation37_spill]] %s4590_s26  ;;  %p3842_p11 = por %p442_p8, %p74_p4 }
  0x33   : > { %4593 = sst [smem:[#allocation38_spill]] %s4592_s13  ;;  %p59_p12 = scmp.eq.s32.totalorder %s58_s12, 0 }
  0x34   : > { %s4594_s16 = scalar_select %p3842_p11, 1, 0 }
  0x35   : > { %p3075_p13 = scmp.lt.s32.totalorder %s3654_s23, 4  ;;  %s3848_s25 = sand.u32 1, %s3634_s18  }
  0x36   : > { %4595 = sst [smem:[#allocation39_spill]] %s4594_s16  ;;  %s3862_s27 = sand.u32 1, %s3654_s23  }
  0x37   : > { %s3851_s11 = scalar_select %p59_p12, %s3634_s18, %s61_s14  }
  0x38   : > { %p3857_p1 = pnand %p3075_p13, %p3820_p3  ;;  %s2639_s12 = sshll.u32 %s3848_s25, 3 }
  0x39   : > { %4596 = sst [smem:[#allocation40_spill]] %s3851_s11  ;;  %s2944_s16 = sshll.u32 %s3650_s22, 3 }
  0x3a   : > { %s488_s14 = scalar_lea.vmem [#allocation6], %s2639_s12  ;;  %s4598_s1 = sld [smem:[#allocation45_spill]] }
  0x3b   : > { %s496_s20 = sshll.u32 %s488_s14, 4  ;;  %s4548_s19 = scalar_lea.sflag [#allocation7], %s3862_s27  ;;  %s497_s20 = int_to_ptr.vmem [resolvable:$true] %s496_s20 }
  0x3c   : > { %s4544_s26 = smov 64   ;;  %s4546_s17 = smov 4  }
  0x3d   : > { %p2652_p3 = scmp.ge.s32.totalorder %s3654_s23, 1  ;;  %p676_p4 = scmp.lt.s32.totalorder %s3654_s23, 5 }
  0x3e   : > { %p120_p7 = scmp.ne.s32.totalorder %s3622_s15, %s3618_s30  ;;  %p126_p8 = scmp.ne.s32.totalorder %s3618_s30, %s3614_s29 }
  0x3f   : > { %p3879_p5 = pnand %p2652_p3, %p676_p4  ;;  %s3897_s12 = sand.u32 1, %s3622_s15  }
  0x40   : > { %s493_s13 = scalar_lea.hbm %s4598_s1, %s2944_s16  ;;  %s4600_s16 = sadd.s32 1, %s3646_s21 }
  0x41   : > { %s494_s5 = sshll.u32 %s493_s13, 4  ;;  %s113_s13 = sadd.s32 1, %s3622_s15  ;;  %s495_s5 = int_to_ptr.hbm [resolvable:$true] %s494_s5 }
  0x42   : > { %3049 = dma.hbm_to_vmem [thread:$0]  (!%p3857_p1), %s495_s5, 128, %s497_s20, %s4548_s19, %s4544_s26, %s4544_s26, %s4546_s17  }
  0x43   : > { %s4660_s16 = smov (%p3807_p0, %s4600_s16), 0  ;;  %p122_p3 = por %p120_p7, %p69_p2 }
  0x44   : > { %4601 = sst [smem:[#allocation41_spill]] %s4660_s16  ;;  %s110_s18 = ssub.s32 %s3646_s21, %s4660_s16 }
  0x45   : > { %p111_p12 = scmp.eq.s32.totalorder %s110_s18, 0  ;;  %p3903_p4 = por %p126_p8, %p75_p6 }
  0x46   : > { %p3912_p0 = pnand %p3075_p13, %p122_p3  ;;  %s3019_s14 = smul.u32 3, %s3897_s12 }
  0x47   : > { %s4602_s5 = scalar_select %p3903_p4, 1, 0 }
  0x48   : > { %s3908_s28 = scalar_select %p111_p12, %s3622_s15, %s113_s13  }
  0x49   : > { %4603 = sst [smem:[#allocation42_spill]] %s4602_s5  ;;  %s3020_s20 = smul.u32 3, %s3646_s21 }
  0x4a   : > { %4604 = sst [smem:[#allocation43_spill]] %s3908_s28  ;;  %s532_s19 = scalar_lea.vmem [#allocation9], %s3019_s14 }
  0x4b   : > { %s4606_s3 = sld [smem:[#allocation47_spill]]  ;;  %s540_s13 = sshll.u32 %s532_s19, 4  ;;  %s541_s13 = int_to_ptr.vmem [resolvable:$true] %s540_s13 }
  0x4c   : > { %s4555_s16 = scalar_lea.sflag [#allocation10], %s3862_s27  ;;  %s4607_s6 = sld [smem:[#allocation50_spill]] }
  0x4d   : > { %s578_s26 = scalar_lea.vmem [#allocation12], %s3897_s12  ;;  %s4556_s19 = scalar_lea.sflag [#allocation13], %s3862_s27 }
  0x4e   : > { %s585_s18 = sshll.u32 %s578_s26, 4  ;;  %s2946_s14 = sshll.u32 %s3646_s21, 7  ;;  %s586_s18 = int_to_ptr.vmem [resolvable:$true] %s585_s18 }
  0x4f   : > { %s4608_s8 = sld [smem:[#allocation52_spill]]  ;;  %s2643_s30 = sshll.u32 %s3897_s12, 6 }
  0x50   : > { %s4609_s10 = sld [smem:[#allocation54_spill]]  ;;  %s4612_s9 = scalar_lea.sflag [#allocation7], %s3862_s27 }
  0x51   : > { %s536_s17 = scalar_lea.hbm %s4606_s3, %s3020_s20  ;;  %s3659_s3 = smov 8  }
  0x52   : > { %s538_s1 = sshll.u32 %s536_s17, 4  ;;  %s581_s23 = scalar_lea.hbm %s4607_s6, %s3646_s21  ;;  %s539_s1 = int_to_ptr.hbm [resolvable:$true] %s538_s1 }
  0x53   : > { %3055 = dma.hbm_to_vmem [thread:$0]  (!%p3912_p0), %s539_s1, 48, %s541_s13, %s4555_s16  }
  0x54   : > { %s583_s5 = sshll.u32 %s581_s23, 4  ;;  %s2646_s17 = sshll.u32 %s3897_s12, 7  ;;  %s584_s5 = int_to_ptr.hbm [resolvable:$true] %s583_s5 }
  0x55   : > { %3061 = dma.hbm_to_vmem [thread:$0]  (!%p3912_p0), %s584_s5, 16, %s586_s18, %s4556_s19  }
  0x56   : > { %s618_s13 = scalar_lea.hbm %s4608_s8, %s2946_s14  ;;  %s613_s28 = scalar_lea.vmem [#allocation15], %s2646_s17 }
  0x57   : > { %s619_s15 = sshll.u32 %s618_s13, 4  ;;  %s621_s26 = sshll.u32 %s613_s28, 4  ;;  %s620_s15 = int_to_ptr.hbm [resolvable:$true] %s619_s15  ;;  %s622_s26 = int_to_ptr.vmem [resolvable:$true] %s621_s26 }
  0x58   : > { %s4558_s23 = scalar_lea.sflag [#allocation16], %s3862_s27  ;;  %s3658_s16 = smov 128  }
  0x59   : > { %3067 = dma.hbm_to_vmem [thread:$0]  (!%p3912_p0), %s620_s15, 2048, %s622_s26, %s4558_s23, %s3658_s16, %s3658_s16, %s3659_s3  }
  0x5a   : > { %s647_s20 = scalar_lea.hbm %s4609_s10, %s2946_s14  ;;  %s642_s13 = scalar_lea.vmem [#allocation17], %s2646_s17 }
  0x5b   : > { %s648_s1 = sshll.u32 %s647_s20, 4  ;;  %s650_s19 = sshll.u32 %s642_s13, 4  ;;  %s3949_s1 = int_to_ptr.hbm [resolvable:$true] %s648_s1  ;;  %s3951_s19 = int_to_ptr.vmem [resolvable:$true] %s650_s19 }
  0x5c   : > { %s2636_s28 = sshll.u32 %s3848_s25, 4  ;;  %s2943_s6 = sshll.u32 %s3650_s22, 4 }
  0x5d   : > { %s4610_s0 = sld [smem:[#allocation44_spill]]  ;;  %s466_s26 = scalar_lea.vmem [#allocation3], %s2636_s28 }
  0x5e   : > { %s474_s5 = sshll.u32 %s466_s26, 4  ;;  %s3017_s17 = smul.u32 192, %s3897_s12  ;;  %s475_s5 = int_to_ptr.vmem [resolvable:$true] %s474_s5 }
  0x5f   : > { %s463_s14 = scalar_lea.sflag [#allocation4], %s3848_s25  ;;  %s3018_s20 = smul.u32 192, %s3646_s21 }
  0x60   : > { %s510_s13 = scalar_lea.vmem [#allocation8], %s3017_s17  ;;  %s4611_s2 = sld [smem:[#allocation46_spill]] }
  0x61   : > { %s518_s23 = sshll.u32 %s510_s13, 4  ;;  %s3660_s28 = smov 192   ;;  %s519_s23 = int_to_ptr.vmem [resolvable:$true] %s518_s23 }
  0x62   : > { %s4613_s4 = sld [smem:[#allocation48_spill]]  ;;  %s4615_s17 = smov 64  }
  0x63   : > { %s471_s15 = scalar_lea.hbm %s4610_s0, %s2943_s6  ;;  %s4617_s7 = sld [smem:[#allocation51_spill]] }
  0x64   : > { %s472_s18 = sshll.u32 %s471_s15, 4  ;;  %s3661_s15 = smov 12   ;;  %s473_s18 = int_to_ptr.hbm [resolvable:$true] %s472_s18 }
  0x65   : > { %3046 = dma.hbm_to_vmem [thread:$0]  (!%p3857_p1), %s473_s18, 256, %s475_s5, %s463_s14, %s3658_s16, %s3658_s16, %s3659_s3  }
  0x66   : > { %s515_s6 = scalar_lea.hbm %s4611_s2, %s3018_s20  ;;  %s2945_s3 = sshll.u32 %s3646_s21, 6 }
  0x67   : > { %s516_s8 = sshll.u32 %s515_s6, 4  ;;  %s551_s16 = scalar_lea.vmem [#allocation11], %s2643_s30  ;;  %s517_s8 = int_to_ptr.hbm [resolvable:$true] %s516_s8 }
  0x68   : > { %3052 = dma.hbm_to_vmem [thread:$0]  (!%p3912_p0), %s517_s8, 3072, %s519_s23, %s4612_s9, %s3660_s28, %s3660_s28, %s3661_s15  }
  0x69   : > { %s556_s25 = scalar_lea.hbm %s4613_s4, %s2945_s3  ;;  %s559_s26 = sshll.u32 %s551_s16, 4  ;;  %s560_s26 = int_to_ptr.vmem [resolvable:$true] %s559_s26 }
  0x6a   : > { %s557_s5 = sshll.u32 %s556_s25, 4  ;;  %s4614_s18 = smov 4   ;;  %s558_s5 = int_to_ptr.hbm [resolvable:$true] %s557_s5 }
  0x6b   : > { %s4616_s14 = scalar_lea.sflag [#allocation10], %s3862_s27  ;;  %s598_s13 = scalar_lea.hbm %s4617_s7, %s3646_s21 }
  0x6c   : > { %3058 = dma.hbm_to_vmem [thread:$0]  (!%p3912_p0), %s558_s5, 1024, %s560_s26, %s4616_s14, %s4615_s17, %s4615_s17, %s4614_s18  }
  0x6d   : > { %s595_s6 = scalar_lea.vmem [#allocation14], %s3897_s12  ;;  %s600_s28 = sshll.u32 %s598_s13, 4  ;;  %s601_s28 = int_to_ptr.hbm [resolvable:$true] %s600_s28 }
  0x6e   : > { %s602_s8 = sshll.u32 %s595_s6, 4  ;;  %s4618_s30 = scalar_lea.sflag [#allocation13], %s3862_s27  ;;  %s603_s8 = int_to_ptr.vmem [resolvable:$true] %s602_s8 }
  0x6f   : > { %3064 = dma.hbm_to_vmem [thread:$0]  (!%p3912_p0), %s601_s28, 16, %s603_s8, %s4618_s30  }
  0x70   : > { %s4619_s15 = scalar_lea.sflag [#allocation16], %s3862_s27  ;;  %680 = sbr.rel (%p3879_p5) target bundleno = 2835 (0xb13), region = 76 }
  0x71   : > { %3070 = dma.hbm_to_vmem [thread:$0]  (!%p3912_p0), %s3949_s1, 2048, %s3951_s19, %s4619_s15, %s4615_s17, %s4615_s17, %s4614_s18  }
  0x72   : > { %s4620_s9 = sld [smem:[#allocation29_spill]] (!%p3879_p5) }
  0x78   : > { %s4003_s10 = sand.u32 1, %s4620_s9  }
  0x79   : > { %s4560_s12 = sshll.u32 %s4003_s10, 4  ;;  %s683_s22 = scalar_lea.sflag [#allocation4], %s4003_s10 }
  0x7a   : > { %s4009_s25 = scalar_lea.vmem [#allocation3], %s4560_s12 }
  0x7b   : > { %3585 = dma.done.wait (%p3832_p9), %s683_s22, 256  }
  0x7c   : > { %3587 = vsyncadd (%p3832_p9), %s683_s22, 4294967040  ;;  %s692_s27 = sand.u32 1, %s3800_s24   ;;  %s2654_s11 = sshll.u32 %s4003_s10, 3 }
  0x7d   : > { %s693_s29 = scalar_lea.sflag [#allocation7], %s692_s27  ;;  %s4017_s19 = scalar_lea.vmem [#allocation6], %s2654_s11 }
  0x7e   : > { %3589 = dma.done.wait (%p3832_p9), %s693_s29, 128  }
  0x7f   : > { %3591 = vsyncadd (%p3832_p9), %s693_s29, 4294967168  ;;  %s4622_s1 = sld [smem:[#allocation26_spill]] }
  0x85   : > { %s4024_s26 = sand.u32 1, %s4622_s1  }
  0x86   : > { %s3021_s5 = smul.u32 192, %s4024_s26 }
  0x88   : > { %s4027_s18 = scalar_lea.vmem [#allocation8], %s3021_s5 }
  0x89   : > { %3593 = dma.done.wait (%p3903_p4), %s693_s29, 3072  }
  0x8a   : > { %3595 = vsyncadd (%p3903_p4), %s693_s29, 4294964224  ;;  %s3022_s24 = smul.u32 3, %s4024_s26  ;;  %s713_s17 = scalar_lea.sflag [#allocation10], %s692_s27 }
  0x8c   : > { %s4034_s14 = scalar_lea.vmem [#allocation9], %s3022_s24 }
  0x8d   : > { %3597 = dma.done.wait (%p3903_p4), %s713_s17, 1072  }
  0x8e   : > { %3599 = vsyncadd (%p3903_p4), %s713_s17, 4294966224  ;;  %s2655_s23 = sshll.u32 %s4024_s26, 6  ;;  %s733_s13 = scalar_lea.sflag [#allocation13], %s692_s27 }
  0x8f   : > { %s4041_s20 = scalar_lea.vmem [#allocation11], %s2655_s23 }
  0x90   : > { %3601 = dma.done.wait (%p3903_p4), %s733_s13, 32  }
  0x91   : > { %3603 = vsyncadd (%p3903_p4), %s733_s13, 4294967264  ;;  %s2656_s8 = sshll.u32 %s4024_s26, 7  ;;  %s751_s30 = scalar_lea.sflag [#allocation16], %s692_s27 }
  0x92   : > { %s4050_s15 = scalar_lea.vmem [#allocation15], %s2656_s8 }
  0x93   : > { %3605 = dma.done.wait (%p3903_p4), %s751_s30, 4096  }
  0x94   : > { %3607 = vsyncadd (%p3903_p4), %s751_s30, 4294963200  ;;  %s4624_s9 = sld [smem:[#allocation31_spill]]  ;;  %s4082_s21 = scalar_lea.vmem [#allocation17], %s2656_s8 }
  0x95   : > { %s4626_s16 = sld [smem:[#allocation53_spill]]  ;;  %s4630_s29 = sshll.u32 %s4003_s10, 4 }
  0x96   : > { %s4627_s30 = sld [smem:[#allocation55_spill]]  ;;  %s4086_s27 = scalar_lea.vmem [#allocation18], %s4630_s29 }
  0x97   : > { %s4628_s0 = sld [smem:[#allocation56_spill]] }
  0x98   : > { %s4629_s4 = sld [smem:[#allocation57_spill]] }
  0x9a   : > { %p866_p2 = scmp.lt.s32.totalorder %s4624_s9, 1  ;;  %p2660_p6 = scmp.ne.s32.totalorder %s4624_s9, 0 }
  0x9c   : > { %s4058_s3 = scalar_select %p866_p2, %s4624_s9, 1 }
  0x9d   : > { %887 = sbr.rel (%p2660_p6) target bundleno = 165 (0xa5), region = 116 }
  0x9e   : > { %s2659_s1 = sshll.u32 %s4058_s3, 1  ;;  %s875_s28 = scalar_lea.vmem %s4627_s30, %s4058_s3 }
  0x9f   : > { %s4068_s17 = scalar_lea.vmem %s4626_s16, %s2659_s1  ;;  %s878_s2 = scalar_lea.vmem %s4628_s0, %s4058_s3 }
  0xa0   : > { %s881_s7 = scalar_lea.vmem %s4629_s4, %s4058_s3 }
  0xa2   : > { %v888_v0 = vld [vmem:[%s4009_s25] sm:$0xff]  ;;  %v889_v1 = vld [vmem:[%s4009_s25 + $0x8] sm:$0xff] }
  0xa3   : > { %890 = vst [vmem:[#allocation2] sm:$0xff] %v888_v0 }
  0xa4   : > { %891 = vst [vmem:[#allocation2 + $0x8] sm:$0xff] %v889_v1 }
  0xa5 PF: > { %v2747_v2 = vld [vmem:[%s4027_s18 + $0xa8] sm:$0xf]  ;;  %v2970_v3 = vld [vmem:[%s4027_s18 + $0xb0] sm:$0xf0]  ;;  %v2969_v4 = vld [vmem:[%s4027_s18 + $0xac] sm:$0xf] }
  0xa6   : > { %v2748_v5 = vor.u32 %v2970_v3, %v2747_v2  ;;  %v2749_v6 = vld [vmem:[%s4027_s18 + $0xb4] sm:$0xf0]  ;;  %v2735_v7 = vld [vmem:[%s4027_s18 + $0x90] sm:$0xf]  ;;  %v2967_v8 = vld [vmem:[%s4027_s18 + $0x98] sm:$0xf0] }
  0xa7   : > { %v2752_v9 = vor.u32 %v2969_v4, %v2749_v6  ;;  %v2966_v10 = vld [vmem:[%s4027_s18 + $0x94] sm:$0xf]  ;;  %v2737_v11 = vld [vmem:[%s4027_s18 + $0x9c] sm:$0xf0]  ;;  %v2736_v12 = vor.u32 %v2967_v8, %v2735_v7  ;;  %v2723_v14 = vld [vmem:[%s4027_s18 + $0x78] sm:$0xf] }
  0xa8   : > { %1063 = vmatpush.bf16.msra.mxu0 %v2748_v5  ;;  %v2740_v13 = vor.u32 %v2966_v10, %v2737_v11  ;;  %v2964_v15 = vld [vmem:[%s4027_s18 + $0x80] sm:$0xf0]  ;;  %v2963_v16 = vld [vmem:[%s4027_s18 + $0x7c] sm:$0xf]  ;;  %v2725_v17 = vld [vmem:[%s4027_s18 + $0x84] sm:$0xf0] }
  0xa9   : > { %1077 = vmatpush.bf16.msra.mxu1 %v2752_v9  ;;  %v2724_v18 = vor.u32 %v2964_v15, %v2723_v14  ;;  %v2728_v19 = vor.u32 %v2963_v16, %v2725_v17  ;;  %v2711_v20 = vld [vmem:[%s4027_s18 + $0x60] sm:$0xf]  ;;  %v2961_v21 = vld [vmem:[%s4027_s18 + $0x68] sm:$0xf0]  ;;  %v2960_v22 = vld [vmem:[%s4027_s18 + $0x64] sm:$0xf] }
  0xaa   : > { %v2713_v23 = vld [vmem:[%s4027_s18 + $0x6c] sm:$0xf0]  ;;  %v2699_v24 = vld [vmem:[%s4027_s18 + $0x48] sm:$0xf]  ;;  %v2712_v25 = vor.u32 %v2961_v21, %v2711_v20  ;;  %v2958_v26 = vld [vmem:[%s4027_s18 + $0x50] sm:$0xf0] }
  0xab   : > { %v2957_v27 = vld [vmem:[%s4027_s18 + $0x4c] sm:$0xf]  ;;  %v2716_v28 = vor.u32 %v2960_v22, %v2713_v23  ;;  %v2701_v29 = vld [vmem:[%s4027_s18 + $0x54] sm:$0xf0]  ;;  %v2700_v30 = vor.u32 %v2958_v26, %v2699_v24  ;;  %v2687_v32 = vld [vmem:[%s4027_s18 + $0x30] sm:$0xf] }
  0xac   : > { %1064 = vmatpush.bf16.msra.mxu0 %v2736_v12  ;;  %v2704_v31 = vor.u32 %v2957_v27, %v2701_v29  ;;  %v2955_v33 = vld [vmem:[%s4027_s18 + $0x38] sm:$0xf0]  ;;  %v2954_v34 = vld [vmem:[%s4027_s18 + $0x34] sm:$0xf]  ;;  %v2689_v35 = vld [vmem:[%s4027_s18 + $0x3c] sm:$0xf0] }
  0xad   : > { %1078 = vmatpush.bf16.msra.mxu1 %v2740_v13  ;;  %v2688_v36 = vor.u32 %v2955_v33, %v2687_v32  ;;  %v2692_v37 = vor.u32 %v2954_v34, %v2689_v35  ;;  %v2675_v38 = vld [vmem:[%s4027_s18 + $0x18] sm:$0xf]  ;;  %v2952_v39 = vld [vmem:[%s4027_s18 + $0x20] sm:$0xf0]  ;;  %v2951_v40 = vld [vmem:[%s4027_s18 + $0x1c] sm:$0xf] }
  0xae   : > { %v2677_v41 = vld [vmem:[%s4027_s18 + $0x24] sm:$0xf0]  ;;  %v2676_v42 = vor.u32 %v2952_v39, %v2675_v38  ;;  %v2663_v44 = vld [vmem:[%s4027_s18] sm:$0xf]  ;;  %v2949_v45 = vld [vmem:[%s4027_s18 + $0x8] sm:$0xf0] }
  0xaf   : > { %v2680_v43 = vor.u32 %v2951_v40, %v2677_v41  ;;  %v2948_v46 = vld [vmem:[%s4027_s18 + $0x4] sm:$0xf]  ;;  %v2665_v47 = vld [vmem:[%s4027_s18 + $0xc] sm:$0xf0]  ;;  %v2664_v48 = vor.u32 %v2949_v45, %v2663_v44  ;;  %v4125_v50 = vld [vmem:[#allocation2 + $0x8] sm:$0xff]  ;;  %vm1133_vm0 = vcmask 261120  }
  0xb0   : > { %1065 = vmatpush.bf16.msra.mxu0 %v2724_v18  ;;  %v4123_v49 = vld [vmem:[#allocation2] sm:$0xff]  ;;  %v2668_v51 = vor.u32 %v2948_v46, %v2665_v47  ;;  %v2755_v56 = vld [vmem:[%s4027_s18 + $0xb0] sm:$0xf]  ;;  %v2971_v57 = vld [vmem:[%s4027_s18 + $0xb8] sm:$0xf0]  ;;  %s3662_s0 = smov 96  }
  0xb1   : > { %1079 = vmatpush.bf16.msra.mxu1 %v2728_v19  ;;  %v4129_v52 = vpack.c.bf16 %v4125_v50, %v4123_v49  ;;  %v4134_v53 = vld [vmem:[%s4034_s14] sm:$0x7]  ;;  %v2743_v58 = vld [vmem:[%s4027_s18 + $0x98] sm:$0xf]  ;;  %v2756_v59 = vor.u32 %v2971_v57, %v2755_v56  ;;  %v2965_v3 = vld [vmem:[%s4027_s18 + $0x88] sm:$0xf0] }
  0xb2   : > { %v929_v54 = vperm.slane %v4134_v53, 0  ;;  %v930_v55 = vperm.slane %v4134_v53, 1  ;;  %v2968_v60 = vld [vmem:[%s4027_s18 + $0xa0] sm:$0xf0]  ;;  %v2731_v2 = vld [vmem:[%s4027_s18 + $0x80] sm:$0xf] }
  0xb3   : > { %1091 = vmatpush.bf16.msra.mxu2 %v2756_v59  ;;  %v2744_v0 = vor.u32 %v2968_v60, %v2743_v58  ;;  %v2732_v6 = vor.u32 %v2965_v3, %v2731_v2  ;;  %v2719_v10 = vld [vmem:[%s4027_s18 + $0x68] sm:$0xf]  ;;  %v2962_v11 = vld [vmem:[%s4027_s18 + $0x70] sm:$0xf0]  ;;  %v2707_v19 = vld [vmem:[%s4027_s18 + $0x50] sm:$0xf] }
  0xb4   : > { %1066 = vmatpush.bf16.msra.mxu0 %v2712_v25  ;;  %v2720_v16 = vor.u32 %v2962_v11, %v2719_v10  ;;  %v2959_v20 = vld [vmem:[%s4027_s18 + $0x58] sm:$0xf0]  ;;  %v2695_v27 = vld [vmem:[%s4027_s18 + $0x38] sm:$0xf]  ;;  %v2683_v32 = vld [vmem:[%s4027_s18 + $0x20] sm:$0xf] }
  0xb5   : > { %1080 = vmatpush.bf16.msra.mxu1 %v2716_v28  ;;  %v2708_v23 = vor.u32 %v2959_v20, %v2707_v19  ;;  %v2956_v28 = vld [vmem:[%s4027_s18 + $0x40] sm:$0xf0]  ;;  %v2953_v33 = vld [vmem:[%s4027_s18 + $0x28] sm:$0xf0]  ;;  %v3014_v45 = vld [vmem:[%s4017_s19] sm:$0xff]   ;;  %vm1172_vm1 = vcmask 64512  }
  0xb6   : > { %v2684_v35 = vor.u32 %v2953_v33, %v2683_v32  ;;  %v4180_v47 = vunpack.c.l.bf16 %v3014_v45  ;;  %vm1206_vm2 = vcmask 1043456   ;;  %s3663_s4 = smov 64   ;;  %s3664_s12 = smov 32  }
  0xb7   : > { %1092 = vmatpush.bf16.msra.mxu2 %v2744_v0  ;;  %s4634_s6 = scalar_lea.vmem [#allocation14], %s4024_s26 }
  0xb8   : > { %1067 = vmatpush.bf16.msra.mxu0 %v2700_v30 }
  0xb9   : > { %1081 = vmatpush.bf16.msra.mxu1 %v2704_v31  ;;  %v2696_v31 = vor.u32 %v2956_v28, %v2695_v27 }
  0xbb   : > { %1093 = vmatpush.bf16.msra.mxu2 %v2732_v6 }
  0xbc   : > { %1068 = vmatpush.bf16.msra.mxu0 %v2688_v36  ;;  %v2671_v36 = vld [vmem:[%s4027_s18 + $0x8] sm:$0xf] }
  0xbd   : > { %1082 = vmatpush.bf16.msra.mxu1 %v2692_v37  ;;  %v2950_v37 = vld [vmem:[%s4027_s18 + $0x10] sm:$0xf0]  ;;  %s4631_s18 = sld [smem:[#allocation49_spill]] }
  0xbe   : > { %v2672_v39 = vor.u32 %v2950_v37, %v2671_v36 }
  0xbf   : > { %1094 = vmatpush.bf16.msra.mxu2 %v2720_v16 }
  0xc0   : > { %1069 = vmatpush.bf16.msra.mxu0 %v2676_v42 }
  0xc1   : > { %1083 = vmatpush.bf16.msra.mxu1 %v2680_v43 }
  0xc3   : > { %1095 = vmatpush.bf16.msra.mxu2 %v2708_v23  ;;  %s4632_s14 = scalar_lea.vmem %s4631_s18, %s4058_s3 }
  0xc4   : > { %1070 = vmatpush.bf16.msra.mxu0 %v2664_v48 }
  0xc5   : > { %1084 = vmatpush.bf16.msra.mxu1 %v2668_v51 }
  0xc7   : > { %1071 = vmatmul.bf16.vlgmr.msra.gmra.mxu0 %v4129_v52  ;;  %1096 = vmatpush.bf16.msra.mxu2 %v2696_v31 }
  0xc8   : > { %1085 = vmatmul.bf16.vlgmr.msra.gmra.mxu1 %v4129_v52 }
  0xcb   : > { %1097 = vmatpush.bf16.msra.mxu2 %v2684_v35 }
  0xcf   : > { %1098 = vmatpush.bf16.msra.mxu2 %v2672_v39 }
  0xd2   : > { %1099 = vmatmul.bf16.vlgmr.msra.gmra.mxu2 %v4129_v52 }
 0x144   : > { %v1072_v61 = vpop.f32.mrf.mxu0 }
 0x145   : > { %v1073_v62 = vadd.f32 %v1072_v61, %v929_v54  ;;  %v1086_v63 = vpop.f32.mrf.mxu1 }
 0x146   : > { %v1087_v1 = vadd.f32 %v1086_v63, %v930_v55 }
 0x147   : > { %v1105_v4 = vmul.f32 0.17677669, %v1073_v62 }
 0x148   : > { %v1129_v5 = vpack.c.bf16 %v1087_v1, %v1087_v1 }
 0x149   : > { %v1127_v7 = vpack.c.bf16 %v1105_v4, %v1105_v4 }
 0x14a   : > { %v1249_v8 = vunpack.c.l.b16 %v1129_v5  ;;  %v1138_v9 = vsel %vm1133_vm0, %v1129_v5, 0 }
 0x14b   : > { %1147 = vmatpush.bf16.xpose.msra.mxu3 %v1138_v9  ;;  %v1244_v17 = vunpack.c.l.b16 %v1127_v7 }
 0x14c   : > { %v4147_v12 = vpack.c.b16 %v1249_v8, %v1249_v8  ;;  %v1074_v13 = vpop.f32.mrf.mxu0  ;;  %v4189_v8 = vunpack.c.h.bf16 %v3014_v45 }
 0x14d   : > { %v1075_v14 = vadd.f32 %v1074_v13, %v929_v54  ;;  %v1088_v15 = vpop.f32.mrf.mxu1  ;;  %v4155_v26 = vpack.c.b16 %v1244_v17, %v1244_v17 }
 0x14e   : > { %v1089_v18 = vadd.f32 %v1088_v15, %v930_v55  ;;  %1251 = vrot.lane.b32.xlu0 %v4147_v12, %s3662_s0  ;;  %v931_v55 = vperm.slane %v4134_v53, 2 }
 0x14f   : > { %v1106_v21 = vmul.f32 0.17677669, %v1075_v14 }
 0x150   : > { %v1130_v22 = vpack.c.bf16 %v1089_v18, %v1089_v18 }
 0x151   : > { %v1128_v29 = vpack.c.bf16 %v1106_v21, %v1106_v21 }
 0x152   : > { %v1278_v24 = vunpack.c.l.b16 %v1130_v22  ;;  %2757 = vmatmul.msk.bf16.vlgmr.msra.gmra.mxu3 %vm1133_vm0, %v1127_v7  ;;  %v1157_v25 = vsel %vm1133_vm0, %v1130_v22, 0 }
 0x153   : > { %1166 = vmatpush.bf16.xpose.msrb.mxu3 %v1157_v25  ;;  %v1273_v34 = vunpack.c.l.b16 %v1128_v29 }
 0x154   : > { %v4159_v30 = vpack.c.b16 %v1278_v24, %v1278_v24 }
 0x155   : > { %v4169_v38 = vpack.c.b16 %v1273_v34, %v1273_v34  ;;  %v1100_v57 = vpop.f32.mrf.mxu2 }
 0x156   : > { %1280 = vrot.lane.b32.xlu1 %v4159_v30, %s3662_s0  ;;  %1246 = vrot.lane.b32.xlu0 %v4155_v26, %s3662_s0  ;;  %v1101_v58 = vadd.f32 %v1100_v57, %v931_v55 }
 0x158   : > { %v1131_v59 = vpack.c.bf16 %v1101_v58, %v1101_v58 }
 0x15a   : > { %v1208_v60 = vsel %vm1206_vm2, %v1131_v59, 0  ;;  %v1332_v9 = vunpack.c.l.b16 %v1131_v59 }
 0x15b   : > { %1217 = vmatpush.bf16.msra.mxu3 %v1208_v60 }
 0x15c   : > { %v4192_v13 = vpack.c.b16 %v1332_v9, %v1332_v9 }
 0x15d   : > { %v1102_v1 = vpop.f32.mrf.mxu2 }
 0x15e   : > { %1275 = vrot.lane.b32.xlu1 %v4169_v38, %s3662_s0  ;;  %v1103_v17 = vadd.f32 %v1102_v1, %v931_v55 }
 0x160   : > { %v1132_v18 = vpack.c.bf16 %v1103_v17, %v1103_v17 }
 0x162   : > { %2758 = vmatmul.msk.bf16.vlgmr.msrb.gmra.mxu3 %vm1133_vm0, %v1128_v29  ;;  %v1227_v22 = vsel %vm1206_vm2, %v1132_v18, 0 }
 0x163   : > { %1236 = vmatpush.bf16.msrb.mxu0 %v1227_v22 }
 0x1c0   : > { %v1252_v40 = vpop.permute.xlu0 %1251 }
 0x1c1   : > { %v1257_v41 = vsel %vm1133_vm0, %v1252_v40, 0 }
 0x1c2   : > { %1266 = vmatpush.bf16.xpose.msrb.mxu1 %v1257_v41 }
 0x1c8   : > { %v1281_v42 = vpop.permute.xlu1 %1280  ;;  %v1247_v43 = vpop.permute.xlu0 %1246 }
 0x1c9   : > { %2761 = vmatmul.msk.bf16.vlgmr.msrb.gmra.mxu1 %vm1133_vm0, %v1247_v43  ;;  %v1286_v44 = vsel %vm1133_vm0, %v1281_v42, 0 }
 0x1ca   : > { %1295 = vmatpush.bf16.xpose.msrb.mxu2 %v1286_v44 }
 0x1d0   : > { %v1276_v46 = vpop.permute.xlu1 %1275 }
 0x1d1   : > { %2762 = vmatmul.msk.bf16.vlgmr.msrb.gmra.mxu2 %vm1133_vm0, %v1276_v46 }
 0x1d5   : > { %v1149_v48 = vpop.f32.mrf.mxu3 }
 0x1d6   : > { %v1150_v51 = vadd.f32 %v4180_v47, %v1149_v48 }
 0x1d8   : > { %v1173_v52 = vsel %vm1172_vm1, %v1150_v51, -inf }
 0x1d9   : > { %1174 = vmax.xlane.f32.xlu2 %v1173_v52 }
 0x1dd   : > { %v1151_v54 = vpop.f32.mrf.mxu3 }
 0x1de   : > { %v1356_v54 = vunpack.c.l.b16 %v1132_v18 }
 0x1e0   : > { %v4212_v55 = vpack.c.b16 %v1356_v54, %v1356_v54 }
 0x1e5   : > { %v1168_v56 = vpop.f32.mrf.mxu3 }
 0x1e6   : > { %v1169_v15 = vadd.f32 %v4189_v8, %v1168_v56 }
 0x1e8   : > { %v1176_v16 = vsel %vm1172_vm1, %v1169_v15, -inf }
 0x1ed   : > { %v1170_v61 = vpop.f32.mrf.mxu3 }
 0x246   : > { %v1268_v62 = vpop.f32.mrf.mxu1 }
 0x247   : > { %v1269_v63 = vadd.f32 %v4180_v47, %v1268_v62 }
 0x249   : > { %v1301_v0 = vsel %vm1172_vm1, %v1269_v63, -inf }
 0x24a   : > { %1302 = vmax.xlane.f32.xlu2 %v1301_v0 }
 0x24c   : > { %v1175_v2 = vpop.xlane.xlu2 %1174 }
 0x24d   : > { %v1179_v3 = vsub.f32 %v1150_v51, %v1175_v2  ;;  %v2975_v2 = vld [vmem:[%s4041_s20 + $0x18] sm:$0xff] }
 0x24e   : > { %v1270_v4 = vpop.f32.mrf.mxu1  ;;  %1401 = vmatpush.bf16.msra.mxu1 %v2975_v2 }
 0x24f   : > { %v1181_v53 = vmul.f32 1.442695, %v1179_v3 }
 0x251   : > { %3184 = vpow2.f32 %v1181_v53  ;;  %v2974_v53 = vld [vmem:[%s4041_s20 + $0x10] sm:$0xff] }
 0x252   : > { %1402 = vmatpush.bf16.msra.mxu1 %v2974_v53 }
 0x254   : > { %v1297_v5 = vpop.f32.mrf.mxu2 }
 0x255   : > { %v1298_v10 = vadd.f32 %v4189_v8, %v1297_v5 }
 0x257   : > { %v3185_v6 = vpop.eup %3184  ;;  %v1304_v14 = vsel %vm1172_vm1, %v1298_v10, -inf }
 0x258   : > { %v1185_v7 = vsel %vm1172_vm1, %v3185_v6, 0.0 }
 0x259   : > { %1186 = vadd.xlane.f32.xlu0 %v1185_v7 }
 0x25c   : > { %v1299_v11 = vpop.f32.mrf.mxu2 }
 0x261   : > { %1305 = vmax.xlane.f32.xlu0 %v1304_v14 }
 0x262   : > { %1334 = vrot.lane.b32.xlu2 %v4192_v13, %s3662_s0 }
 0x26a   : > { %1440 = vrot.lane.b32.xlu2 %v4147_v12, %s3663_s4 }
 0x272   : > { %1438 = vrot.lane.b32.xlu2 %v4155_v26, %s3663_s4 }
 0x29b   : > { %1177 = vmax.xlane.f32.xlu2 %v1176_v16 }
 0x2bd   : > { %v1303_v19 = vpop.xlane.xlu2 %1302 }
 0x2be   : > { %v1307_v20 = vsub.f32 %v1269_v63, %v1303_v19 }
 0x2c0   : > { %v1309_v21 = vmul.f32 1.442695, %v1307_v20 }
 0x2c2   : > { %3186 = vpow2.f32 %v1309_v21 }
 0x2c5   : > { %v1335_v23 = vpop.permute.xlu2 %1334 }
 0x2c6   : > { %v1340_v24 = vsel %vm1206_vm2, %v1335_v23, 0 }
 0x2c7   : > { %1349 = vmatpush.bf16.msrb.mxu3 %v1340_v24 }
 0x2c8   : > { %v3187_v25 = vpop.eup %3186 }
 0x2c9   : > { %v1313_v27 = vsel %vm1172_vm1, %v3187_v25, 0.0 }
 0x2ca   : > { %1314 = vadd.xlane.f32.xlu1 %v1313_v27 }
 0x2cc   : > { %v1187_v28 = vpop.xlane.xlu0 %1186 }
 0x2cd   : > { %3188 = vrcp.f32 %v1187_v28  ;;  %v1441_v39 = vpop.permute.xlu2 %1440 }
 0x2ce   : > { %v1446_v41 = vsel %vm1133_vm0, %v1441_v39, 0 }
 0x2d3   : > { %v3189_v29 = vpop.eup %3188 }
 0x2d4   : > { %v1193_v31 = vmul.f32 %v3189_v29, %v1187_v28  ;;  %v1306_v32 = vpop.xlane.xlu0 %1305 }
 0x2d5   : > { %v1308_v33 = vsub.f32 %v1298_v10, %v1306_v32  ;;  %v1439_v44 = vpop.permute.xlu2 %1438  ;;  %v2972_v32 = vld [vmem:[%s4041_s20] sm:$0xff] }
 0x2d6   : > { %v1195_v34 = vsub.f32 2.0, %v1193_v31 }
 0x2d7   : > { %v1311_v35 = vmul.f32 1.442695, %v1308_v33 }
 0x2d8   : > { %v1197_v36 = vmul.f32 %v3189_v29, %v1195_v34 }
 0x2d9   : > { %3190 = vpow2.f32 %v1311_v35 }
 0x2da   : > { %v1199_v37 = vmul.f32 %v3185_v6, %v1197_v36 }
 0x2dc   : > { %v1201_v40 = vpack.c.bf16 %v1199_v37, %v1199_v37 }
 0x2de   : > { %2759 = vmatmul.msk.bf16.vlgmr.msra.gmra.mxu3 %vm1172_vm1, %v1201_v40 }
 0x2df   : > { %v3191_v42 = vpop.eup %3190  ;;  %1455 = vmatpush.bf16.xpose.msra.mxu3 %v1446_v41 }
 0x2e0   : > { %v1316_v43 = vsel %vm1172_vm1, %v3191_v42, 0.0 }
 0x2e1   : > { %1317 = vadd.xlane.f32.xlu0 %v1316_v43 }
 0x2f5   : > { %1463 = vrot.lane.b32.xlu0 %v4159_v30, %s3663_s4 }
 0x30e   : > { %v1178_v45 = vpop.xlane.xlu2 %1177 }
 0x30f   : > { %v1180_v46 = vsub.f32 %v1169_v15, %v1178_v45 }
 0x311   : > { %v1183_v48 = vmul.f32 1.442695, %v1180_v46 }
 0x313   : > { %3192 = vpow2.f32 %v1183_v48 }
 0x319   : > { %v3193_v51 = vpop.eup %3192 }
 0x31a   : > { %v1188_v52 = vsel %vm1172_vm1, %v3193_v51, 0.0 }
 0x31b   : > { %1189 = vadd.xlane.f32.xlu1 %v1188_v52 }
 0x334   : > { %1358 = vrot.lane.b32.xlu1 %v4212_v55, %s3662_s0 }
 0x33c   : > { %1461 = vrot.lane.b32.xlu1 %v4169_v38, %s3663_s4 }
 0x33d   : > { %v1315_v56 = vpop.xlane.xlu1 %1314 }
 0x33e   : > { %3194 = vrcp.f32 %v1315_v56 }
 0x344   : > { %v3195_v57 = vpop.eup %3194  ;;  %1514 = vrot.lane.b32.xlu1 %v4192_v13, %s3663_s4 }
 0x345   : > { %v1321_v58 = vmul.f32 %v3195_v57, %v1315_v56 }
 0x347   : > { %v1323_v59 = vsub.f32 2.0, %v1321_v58 }
 0x349   : > { %v1325_v60 = vmul.f32 %v3195_v57, %v1323_v59 }
 0x34b   : > { %v1327_v61 = vmul.f32 %v3187_v25, %v1325_v60  ;;  %v2973_v25 = vld [vmem:[%s4041_s20 + $0x8] sm:$0xff] }
 0x34c   : > { %1613 = vrot.lane.b32.xlu1 %v4159_v30, %s3664_s12  ;;  %1430 = vmatpush.bf16.msra.mxu2 %v2973_v25 }
 0x34d   : > { %v1329_v62 = vpack.c.bf16 %v1327_v61, %v1327_v61 }
 0x34f   : > { %2763 = vmatmul.msk.bf16.vlgmr.msrb.gmra.mxu3 %vm1172_vm1, %v1329_v62 }
 0x350   : > { %1431 = vmatpush.bf16.msra.mxu2 %v2972_v32 }
 0x354   : > { %1588 = vrot.lane.b32.xlu1 %v4155_v26, %s3664_s12  ;;  %v1318_v3 = vpop.xlane.xlu0 %1317 }
 0x35c   : > { %1611 = vrot.lane.b32.xlu1 %v4169_v38, %s3664_s12 }
 0x35f   : > { %2783 = vmatmul.msk.bf16.vlgmr.msra.gmra.mxu3 %vm1133_vm0, %v1439_v44 }
 0x361   : > { %v1219_v63 = vpop.f32.mrf.mxu3 }
 0x367   : > { %v1464_v11 = vpop.permute.xlu0 %1463 }
 0x368   : > { %v1469_v17 = vsel %vm1133_vm0, %v1464_v11, 0 }
 0x369   : > { %v1221_v0 = vpop.f32.mrf.mxu3 }
 0x38e   : > { %v1190_v1 = vpop.xlane.xlu1 %1189 }
 0x38f   : > { %3196 = vrcp.f32 %v1190_v1 }
 0x390   : > { %3198 = vrcp.f32 %v1318_v3 }
 0x395   : > { %v3197_v30 = vpop.eup %3196 }
 0x396   : > { %v1194_v4 = vmul.f32 %v3197_v30, %v1190_v1  ;;  %v3199_v26 = vpop.eup %3198 }
 0x397   : > { %v1322_v9 = vmul.f32 %v3199_v26, %v1318_v3 }
 0x398   : > { %v1196_v5 = vsub.f32 2.0, %v1194_v4 }
 0x399   : > { %v1324_v10 = vsub.f32 2.0, %v1322_v9 }
 0x39a   : > { %v1198_v6 = vmul.f32 %v3197_v30, %v1196_v5 }
 0x39b   : > { %v1326_v14 = vmul.f32 %v3199_v26, %v1324_v10 }
 0x39c   : > { %v1200_v7 = vmul.f32 %v3193_v51, %v1198_v6 }
 0x39d   : > { %v1328_v18 = vmul.f32 %v3191_v42, %v1326_v14 }
 0x39e   : > { %v1202_v38 = vpack.c.bf16 %v1200_v7, %v1200_v7 }
 0x39f   : > { %v1330_v19 = vpack.c.bf16 %v1328_v18, %v1328_v18 }
 0x3a0   : > { %2760 = vmatmul.msk.bf16.vlgmr.msrb.gmra.mxu0 %vm1172_vm1, %v1202_v38 }
 0x3a6   : > { %v1359_v15 = vpop.permute.xlu1 %1358 }
 0x3a7   : > { %v1364_v16 = vsel %vm1206_vm2, %v1359_v15, 0 }
 0x3a8   : > { %1373 = vmatpush.bf16.msra.mxu0 %v1364_v16 }
 0x3ac   : > { %1478 = vmatpush.bf16.xpose.msrb.mxu0 %v1469_v17 }
 0x3ae   : > { %v1462_v20 = vpop.permute.xlu1 %1461 }
 0x3b0   : > { %2764 = vmatmul.msk.bf16.vlgmr.msra.gmra.mxu0 %vm1172_vm1, %v1330_v19 }
 0x3b6   : > { %v1515_v21 = vpop.permute.xlu1 %1514 }
 0x3b7   : > { %v1520_v22 = vsel %vm1206_vm2, %v1515_v21, 0 }
 0x3b8   : > { %1529 = vmatpush.bf16.msrb.mxu1 %v1520_v22 }
 0x3be   : > { %v1614_v36 = vpop.permute.xlu1 %1613 }
 0x3bf   : > { %v1619_v40 = vsel %vm1133_vm0, %v1614_v36, 0 }
 0x3c0   : > { %2784 = vmatmul.msk.bf16.vlgmr.msrb.gmra.mxu0 %vm1133_vm0, %v1462_v20 }
 0x3c6   : > { %v1589_v30 = vpop.permute.xlu1 %1588 }
 0x3ce   : > { %v1612_v53 = vpop.permute.xlu1 %1611 }
 0x3d2   : > { %v1351_v23 = vpop.f32.mrf.mxu3 }
 0x3da   : > { %v1353_v24 = vpop.f32.mrf.mxu3 }
 0x3e2   : > { %v1457_v27 = vpop.f32.mrf.mxu3 }
 0x3e3   : > { %v1458_v28 = vadd.f32 %v4180_v47, %v1457_v27 }
 0x3e5   : > { %v1484_v29 = vsel %vm1172_vm1, %v1458_v28, -inf }
 0x3e6   : > { %1485 = vmax.xlane.f32.xlu0 %v1484_v29 }
 0x3ea   : > { %v1459_v31 = vpop.f32.mrf.mxu3 }
 0x3fa   : > { %1535 = vrot.lane.b32.xlu0 %v4212_v55, %s3663_s4 }
 0x41d   : > { %v1238_v33 = vpop.f32.mrf.mxu0 }
 0x41e   : > { %v1242_v34 = vpack.c.bf16 %v1238_v33, %v1219_v63 }
 0x420   : > { %2782 = vmatmul.msk.bf16.vlgmr.msra.gmra.mxu2 %vm1133_vm0, %v1242_v34 }
 0x425   : > { %v1240_v35 = vpop.f32.mrf.mxu0 }
 0x42d   : > { %v1375_v37 = vpop.f32.mrf.mxu0 }
 0x42e   : > { %v1379_v39 = vpack.c.bf16 %v1375_v37, %v1351_v23  ;;  %v2977_v37 = vld [vmem:[%s4041_s20 + $0x28] sm:$0xff] }
 0x42f   : > { %1578 = vmatpush.bf16.msrb.mxu3 %v2977_v37  ;;  %v2994_v37 = vld [vmem:[%s4050_s15 + $0x74] sm:$0xf] }
 0x430   : > { %2773 = vmatmul.msk.bf16.vlgmr.msra.gmra.mxu1 %vm1133_vm0, %v1379_v39 }
 0x431   : > { %1628 = vmatpush.bf16.xpose.msra.mxu1 %v1619_v40 }
 0x435   : > { %v1377_v41 = vpop.f32.mrf.mxu0 }
 0x436   : > { %v2976_v41 = vld [vmem:[%s4041_s20 + $0x20] sm:$0xff] }
 0x437   : > { %1579 = vmatpush.bf16.msrb.mxu3 %v2976_v41 }
 0x43d   : > { %v1480_v42 = vpop.f32.mrf.mxu0 }
 0x43e   : > { %v1481_v56 = vadd.f32 %v4189_v8, %v1480_v42 }
 0x440   : > { %v1487_v57 = vsel %vm1172_vm1, %v1481_v56, -inf }
 0x445   : > { %v1482_v43 = vpop.f32.mrf.mxu0 }
 0x459   : > { %v1486_v44 = vpop.xlane.xlu0 %1485 }
 0x45a   : > { %v1490_v45 = vsub.f32 %v1458_v28, %v1486_v44 }
 0x45c   : > { %v1492_v46 = vmul.f32 1.442695, %v1490_v45 }
 0x45e   : > { %3200 = vpow2.f32 %v1492_v46 }
 0x464   : > { %v3201_v48 = vpop.eup %3200 }
 0x465   : > { %v1496_v51 = vsel %vm1172_vm1, %v3201_v48, 0.0 }
 0x466   : > { %1497 = vadd.xlane.f32.xlu2 %v1496_v51 }
 0x46c   : > { %v1536_v52 = vpop.permute.xlu0 %1535 }
 0x46d   : > { %v1541_v54 = vsel %vm1206_vm2, %v1536_v52, 0 }
 0x46e   : > { %1550 = vmatpush.bf16.msrb.mxu2 %v1541_v54 }
 0x47e   : > { %1590 = vrot.lane.b32.xlu2 %v4147_v12, %s3664_s12 }
 0x4a3   : > { %v1433_v58 = vpop.f32.mrf.mxu2 }
 0x4a7   : > { %1488 = vmax.xlane.f32.xlu2 %v1487_v57 }
 0x4ab   : > { %v1435_v42 = vpop.f32.mrf.mxu2 }
 0x4ad   : > { %v1404_v59 = vpop.f32.mrf.mxu1 }
 0x4ae   : > { %v4251_v60 = vadd.f32 %v1433_v58, %v1404_v59 }
 0x4b5   : > { %v4258_v38 = vpop.f32.mrf.mxu1 }
 0x4d9   : > { %v1498_v61 = vpop.xlane.xlu2 %1497 }
 0x4da   : > { %3202 = vrcp.f32 %v1498_v61 }
 0x4e0   : > { %v3203_v62 = vpop.eup %3202 }
 0x4e1   : > { %v1504_v63 = vmul.f32 %v3203_v62, %v1498_v61  ;;  %v1591_v0 = vpop.permute.xlu2 %1590 }
 0x4e2   : > { %v1596_v1 = vsel %vm1133_vm0, %v1591_v0, 0 }
 0x4e3   : > { %v1506_v2 = vsub.f32 2.0, %v1504_v63  ;;  %1605 = vmatpush.bf16.xpose.msra.mxu0 %v1596_v1 }
 0x4e5   : > { %v1508_v3 = vmul.f32 %v3203_v62, %v1506_v2 }
 0x4e7   : > { %v1510_v12 = vmul.f32 %v3201_v48, %v1508_v3 }
 0x4e9   : > { %v1512_v4 = vpack.c.bf16 %v1510_v12, %v1510_v12 }
 0x4ea   : > { %2796 = vmatmul.msk.bf16.vlgmr.msra.gmra.mxu0 %vm1133_vm0, %v1589_v30 }
 0x4eb   : > { %2785 = vmatmul.msk.bf16.vlgmr.msrb.gmra.mxu1 %vm1172_vm1, %v1512_v4  ;;  %v2979_v4 = vld [vmem:[%s4041_s20 + $0x38] sm:$0xff] }
 0x4ec   : > { %1728 = vmatpush.bf16.msrb.mxu0 %v2979_v4  ;;  %v2827_v4 = vld [vmem:[%s4050_s15 + $0x20] sm:$0xf] }
 0x4fb   : > { %2797 = vmatmul.msk.bf16.vlgmr.msra.gmra.mxu1 %vm1133_vm0, %v1612_v53  ;;  %v2978_v53 = vld [vmem:[%s4041_s20 + $0x30] sm:$0xff]  ;;  %s4633_s20 = scalar_lea.vmem [#allocation12], %s4024_s26 }
 0x4fc   : > { %1729 = vmatpush.bf16.msrb.mxu0 %v2978_v53  ;;  %v2985_v53 = vld [vmem:[%s4050_s15 + $0x24] sm:$0xf0] }
 0x51a   : > { %v1489_v5 = vpop.xlane.xlu2 %1488 }
 0x51b   : > { %v1491_v6 = vsub.f32 %v1481_v56, %v1489_v5 }
 0x51d   : > { %v1494_v26 = vmul.f32 1.442695, %v1491_v6 }
 0x51f   : > { %3204 = vpow2.f32 %v1494_v26 }
 0x525   : > { %v3205_v7 = vpop.eup %3204 }
 0x526   : > { %v1499_v9 = vsel %vm1172_vm1, %v3205_v7, 0.0 }
 0x527   : > { %1500 = vadd.xlane.f32.xlu1 %v1499_v9 }
 0x567   : > { %v1607_v10 = vpop.f32.mrf.mxu0 }
 0x568   : > { %v1608_v11 = vadd.f32 %v4180_v47, %v1607_v10  ;;  %v1531_v14 = vpop.f32.mrf.mxu1 }
 0x56a   : > { %v1634_v15 = vsel %vm1172_vm1, %v1608_v11, -inf }
 0x56b   : > { %1635 = vmax.xlane.f32.xlu0 %v1634_v15 }
 0x56f   : > { %v1609_v16 = vpop.f32.mrf.mxu0 }
 0x570   : > { %v1533_v17 = vpop.f32.mrf.mxu1  ;;  %v1436_v16 = vadd.f32 %v1435_v42, %v4258_v38  ;;  %v2859_v42 = vld [vmem:[%s4050_s15 + $0x60] sm:$0xf] }
 0x578   : > { %v1630_v18 = vpop.f32.mrf.mxu1 }
 0x579   : > { %v1631_v19 = vadd.f32 %v4189_v8, %v1630_v18 }
 0x57b   : > { %v1637_v20 = vsel %vm1172_vm1, %v1631_v19, -inf }
 0x57c   : > { %1638 = vmax.xlane.f32.xlu2 %v1637_v20 }
 0x580   : > { %v1632_v21 = vpop.f32.mrf.mxu1 }
 0x59a   : > { %v1501_v22 = vpop.xlane.xlu1 %1500 }
 0x59b   : > { %3206 = vrcp.f32 %v1501_v22 }
 0x5a1   : > { %v3207_v23 = vpop.eup %3206 }
 0x5a2   : > { %v1505_v24 = vmul.f32 %v3207_v23, %v1501_v22 }
 0x5a4   : > { %v1507_v25 = vsub.f32 2.0, %v1505_v24 }
 0x5a6   : > { %v1509_v47 = vmul.f32 %v3207_v23, %v1507_v25  ;;  %v3665_v23 = vmov 128.0  }
 0x5a8   : > { %v1511_v27 = vmul.f32 %v3205_v7, %v1509_v47 }
 0x5aa   : > { %v1513_v28 = vpack.c.bf16 %v1511_v27, %v1511_v27 }
 0x5ac   : > { %2786 = vmatmul.msk.bf16.vlgmr.msrb.gmra.mxu2 %vm1172_vm1, %v1513_v28 }
 0x5de   : > { %v1636_v29 = vpop.xlane.xlu0 %1635 }
 0x5df   : > { %v1640_v31 = vsub.f32 %v1608_v11, %v1636_v29  ;;  %v3178_v11 = vld [vmem:[%s4632_s14] ss:$0 sm:$0xff] }
 0x5e1   : > { %v1642_v32 = vmul.f32 1.442695, %v1640_v31 }
 0x5e3   : > { %3208 = vpow2.f32 %v1642_v32 }
 0x5e9   : > { %v3209_v8 = vpop.eup %3208 }
 0x5ea   : > { %v1646_v33 = vsel %vm1172_vm1, %v3209_v8, 0.0 }
 0x5eb   : > { %1647 = vadd.xlane.f32.xlu1 %v1646_v33 }
 0x5ef   : > { %v1639_v34 = vpop.xlane.xlu2 %1638 }
 0x5f0   : > { %v1641_v35 = vsub.f32 %v1631_v19, %v1639_v34 }
 0x5f2   : > { %v1644_v36 = vmul.f32 1.442695, %v1641_v35  ;;  %v2867_v35 = vld [vmem:[%s4050_s15 + $0x70] sm:$0xf] }
 0x5f4   : > { %3210 = vpow2.f32 %v1644_v36  ;;  %v2995_v36 = vld [vmem:[%s4050_s15 + $0x74] sm:$0xf0] }
 0x5fa   : > { %v3211_v39 = vpop.eup %3210 }
 0x5fb   : > { %v1649_v40 = vsel %vm1172_vm1, %v3211_v39, 0.0 }
 0x5fc   : > { %1650 = vadd.xlane.f32.xlu2 %v1649_v40  ;;  %v2869_v40 = vld [vmem:[%s4050_s15 + $0x78] sm:$0xf0] }
 0x5fd   : > { %v2872_v41 = vor.u32 %v2994_v37, %v2869_v40 }
 0x604   : > { %1664 = vrot.lane.b32.xlu1 %v4192_v13, %s3664_s12 }
 0x614   : > { %1685 = vrot.lane.b32.xlu2 %v4212_v55, %s3664_s12 }
 0x62f   : > { %v1552_v43 = vpop.f32.mrf.mxu2 }
 0x630   : > { %v1556_v44 = vpack.c.bf16 %v1552_v43, %v1531_v14  ;;  %v2993_v43 = vld [vmem:[%s4050_s15 + $0x64] sm:$0xf0] }
 0x632   : > { %2795 = vmatmul.msk.bf16.vlgmr.msrb.gmra.mxu3 %vm1133_vm0, %v1556_v44  ;;  %v2992_v44 = vld [vmem:[%s4050_s15 + $0x64] sm:$0xf] }
 0x637   : > { %v1554_v45 = vpop.f32.mrf.mxu2 }
 0x638   : > { %v2860_v45 = vor.u32 %v2993_v43, %v2859_v42  ;;  %v3179_v42 = vld [vmem:[%s4633_s20] ss:$0 sm:$0xff] }
 0x65e   : > { %v1648_v46 = vpop.xlane.xlu1 %1647 }
 0x65f   : > { %3212 = vrcp.f32 %v1648_v46 }
 0x665   : > { %v3213_v48 = vpop.eup %3212 }
 0x666   : > { %v1654_v51 = vmul.f32 %v3213_v48, %v1648_v46  ;;  %v2861_v46 = vld [vmem:[%s4050_s15 + $0x68] sm:$0xf0] }
 0x668   : > { %v1656_v52 = vsub.f32 2.0, %v1654_v51  ;;  %v2851_v51 = vld [vmem:[%s4050_s15 + $0x50] sm:$0xf] }
 0x66a   : > { %v1658_v56 = vmul.f32 %v3213_v48, %v1656_v52  ;;  %v2864_v48 = vor.u32 %v2992_v44, %v2861_v46  ;;  %v2991_v52 = vld [vmem:[%s4050_s15 + $0x54] sm:$0xf0] }
 0x66c   : > { %v1660_v13 = vmul.f32 %v3209_v8, %v1658_v56  ;;  %v2852_v56 = vor.u32 %v2991_v52, %v2851_v51 }
 0x66e   : > { %v1662_v63 = vpack.c.bf16 %v1660_v13, %v1660_v13  ;;  %v2853_v13 = vld [vmem:[%s4050_s15 + $0x58] sm:$0xf0] }
 0x66f   : > { %v1651_v54 = vpop.xlane.xlu2 %1650 }
 0x670   : > { %3214 = vrcp.f32 %v1651_v54 }
 0x671   : > { %3216 = vrcp.f32 %v3665_v23 }
 0x676   : > { %v3215_v57 = vpop.eup %3214  ;;  %v1665_v58 = vpop.permute.xlu1 %1664 }
 0x677   : > { %v1655_v59 = vmul.f32 %v3215_v57, %v1651_v54  ;;  %v1670_v55 = vsel %vm1206_vm2, %v1665_v58, 0  ;;  %v1686_v61 = vpop.permute.xlu2 %1685  ;;  %v3217_v24 = vpop.eup %3216  ;;  %v2990_v54 = vld [vmem:[%s4050_s15 + $0x54] sm:$0xf]  ;;  %v2843_v58 = vld [vmem:[%s4050_s15 + $0x40] sm:$0xf] }
 0x678   : > { %v1691_v62 = vsel %vm1206_vm2, %v1686_v61, 0  ;;  %1679 = vmatpush.bf16.msra.mxu2 %v1670_v55  ;;  %v1753_v25 = vmul.f32 128.0, %v3217_v24  ;;  %vm1757_vm3 = vweird.f32 %v3217_v24  ;;  %v2988_v55 = vld [vmem:[%s4050_s15 + $0x44] sm:$0xf] }
 0x679   : > { %v1657_v0 = vsub.f32 2.0, %v1655_v59  ;;  %1700 = vmatpush.bf16.msra.mxu3 %v1691_v62  ;;  %v2989_v59 = vld [vmem:[%s4050_s15 + $0x44] sm:$0xf0]  ;;  %v2845_v62 = vld [vmem:[%s4050_s15 + $0x48] sm:$0xf0] }
 0x67a   : > { %v1754_v47 = vsub.f32 1.0, %v1753_v25  ;;  %v2844_v61 = vor.u32 %v2989_v59, %v2843_v58 }
 0x67b   : > { %v1659_v1 = vmul.f32 %v3215_v57, %v1657_v0  ;;  %2798 = vmatmul.msk.bf16.vlgmr.msra.gmra.mxu2 %vm1172_vm1, %v1662_v63  ;;  %v2856_v57 = vor.u32 %v2990_v54, %v2853_v13  ;;  %v2848_v63 = vor.u32 %v2988_v55, %v2845_v62  ;;  %v2835_v0 = vld [vmem:[%s4050_s15 + $0x30] sm:$0xf] }
 0x67c   : > { %v1755_v27 = vmul.f32 %v3217_v24, %v1754_v47  ;;  %1922 = vmatpush.bf16.msrb.mxu2 %v2872_v41 }
 0x67d   : > { %v1661_v2 = vmul.f32 %v3211_v39, %v1659_v1  ;;  %v2868_v39 = vor.u32 %v2995_v36, %v2867_v35  ;;  %v2987_v1 = vld [vmem:[%s4050_s15 + $0x34] sm:$0xf0] }
 0x67e   : > { %v1756_v38 = vadd.f32 %v3217_v24, %v1755_v27 }
 0x67f   : > { %v1663_v3 = vpack.c.bf16 %v1661_v2, %v1661_v2  ;;  %1908 = vmatpush.bf16.msrb.mxu1 %v2868_v39  ;;  %v2986_v2 = vld [vmem:[%s4050_s15 + $0x34] sm:$0xf] }
 0x680   : > { %1923 = vmatpush.bf16.msrb.mxu2 %v2864_v48  ;;  %v3180_v48 = vld [vmem:[%s4634_s6] ss:$0 sm:$0xff] }
 0x681   : > { %2799 = vmatmul.msk.bf16.vlgmr.msra.gmra.mxu3 %vm1172_vm1, %v1663_v3  ;;  %v2836_v3 = vor.u32 %v2987_v1, %v2835_v0 }
 0x683   : > { %1909 = vmatpush.bf16.msrb.mxu1 %v2860_v45 }
 0x684   : > { %1924 = vmatpush.bf16.msrb.mxu2 %v2856_v57 }
 0x687   : > { %1910 = vmatpush.bf16.msrb.mxu1 %v2852_v56  ;;  %v1822_v56 = vld [vmem:[%s4068_s17] sm:$0x3] }
 0x688   : > { %1925 = vmatpush.bf16.msrb.mxu2 %v2848_v63  ;;  %v1824_v13 = vperm.slane %v1822_v56, 0  ;;  %v1825_v59 = vperm.slane %v1822_v56, 1 }
 0x68b   : > { %1911 = vmatpush.bf16.msrb.mxu1 %v2844_v61  ;;  %v3003_v61 = vld [vmem:[%s4082_s21 + $0x38] sm:$0xff] }
 0x68c   : > { %2230 = vmatpush.bf16.msrb.mxu3 %v3003_v61 }
 0x68f   : > { %1912 = vmatpush.bf16.msrb.mxu1 %v2836_v3 }
 0x6b5   : > { %v1581_v12 = vpop.f32.mrf.mxu3 }
 0x6b6   : > { %v1586_v30 = vadd.f32 %v1581_v12, %v4251_v60  ;;  %v2837_v12 = vld [vmem:[%s4050_s15 + $0x38] sm:$0xf0] }
 0x6bd   : > { %v1583_v5 = vpop.f32.mrf.mxu3 }
 0x6be   : > { %v1587_v18 = vadd.f32 %v1583_v5, %v1436_v16  ;;  %v2984_v5 = vld [vmem:[%s4050_s15 + $0x24] sm:$0xf]  ;;  %v2981_v16 = vld [vmem:[%s4050_s15 + $0x4] sm:$0xf0] }
 0x6fe   : > { %v1681_v6 = vpop.f32.mrf.mxu2 }
 0x704   : > { %v1702_v26 = vpop.f32.mrf.mxu3 }
 0x705   : > { %v1706_v7 = vpack.c.bf16 %v1702_v26, %v1681_v6  ;;  %v2828_v6 = vor.u32 %v2985_v53, %v2827_v4  ;;  %v2829_v26 = vld [vmem:[%s4050_s15 + $0x28] sm:$0xf0]  ;;  %v3011_v4 = vld [vmem:[%s4082_s21 + $0x78] sm:$0xff] }
 0x706   : > { %v1683_v9 = vpop.f32.mrf.mxu2  ;;  %2244 = vmatpush.bf16.msra.mxu0 %v3011_v4 }
 0x707   : > { %2808 = vmatmul.msk.bf16.vlgmr.msrb.gmra.mxu0 %vm1133_vm0, %v1706_v7  ;;  %v2832_v7 = vor.u32 %v2984_v5, %v2829_v26  ;;  %1913 = vmatpush.bf16.msrb.mxu1 %v2828_v6  ;;  %v2819_v9 = vld [vmem:[%s4050_s15 + $0x10] sm:$0xf]  ;;  %v3001_v6 = vld [vmem:[%s4082_s21 + $0x28] sm:$0xff] }
 0x70c   : > { %v1704_v10 = vpop.f32.mrf.mxu3 }
 0x70d   : > { %v2983_v10 = vld [vmem:[%s4050_s15 + $0x14] sm:$0xf0] }
 0x784   : > { %v1731_v14 = vpop.f32.mrf.mxu0 }
 0x785   : > { %v1736_v15 = vadd.f32 %v1731_v14, %v1586_v30  ;;  %v2840_v30 = vor.u32 %v2986_v2, %v2837_v12  ;;  %v2820_v14 = vor.u32 %v2983_v10, %v2819_v9  ;;  %v3002_v12 = vld [vmem:[%s4082_s21 + $0x30] sm:$0xff] }
 0x786   : > { %2231 = vmatpush.bf16.msrb.mxu3 %v3002_v12 }
 0x787   : > { %v1742_v60 = vadd.f32 %v3178_v11, %v1736_v15  ;;  %1926 = vmatpush.bf16.msrb.mxu2 %v2840_v30  ;;  %v2821_v15 = vld [vmem:[%s4050_s15 + $0x18] sm:$0xf0]  ;;  %1914 = vmatpush.bf16.msrb.mxu1 %v2820_v14 }
 0x789   : > { %v1744_v17 = vadd.f32 %v1742_v60, %v4123_v49  ;;  %v4290_v49 = vsel %vm1757_vm3, %v3217_v24, %v1756_v38  ;;  %v2811_v60 = vld [vmem:[%s4050_s15] sm:$0xf] }
 0x78a   : > { %2232 = vmatpush.bf16.msrb.mxu3 %v3001_v6  ;;  %v2996_v6 = vld [vmem:[%s4082_s21] sm:$0xff] }
 0x78b   : > { %1748 = vadd.xlane.f32.xlu0 %v1744_v17  ;;  %1927 = vmatpush.bf16.msrb.mxu2 %v2832_v7 }
 0x78c   : > { %v1733_v19 = vpop.f32.mrf.mxu0 }
 0x78d   : > { %v1737_v20 = vadd.f32 %v1733_v19, %v1587_v18  ;;  %v2980_v19 = vld [vmem:[%s4050_s15 + $0x4] sm:$0xf] }
 0x78f   : > { %v1743_v21 = vadd.f32 %v3178_v11, %v1737_v20  ;;  %v2982_v11 = vld [vmem:[%s4050_s15 + $0x14] sm:$0xf]  ;;  %v2813_v20 = vld [vmem:[%s4050_s15 + $0x8] sm:$0xf0] }
 0x790   : > { %v2824_v18 = vor.u32 %v2982_v11, %v2821_v15  ;;  %v2816_v23 = vor.u32 %v2980_v19, %v2813_v20  ;;  %v3010_v11 = vld [vmem:[%s4082_s21 + $0x70] sm:$0xff] }
 0x791   : > { %v1745_v22 = vadd.f32 %v1743_v21, %v4125_v50  ;;  %2245 = vmatpush.bf16.msra.mxu0 %v3010_v11 }
 0x792   : > { %1928 = vmatpush.bf16.msrb.mxu2 %v2824_v18  ;;  %v3000_v18 = vld [vmem:[%s4082_s21 + $0x20] sm:$0xff] }
 0x793   : > { %1750 = vadd.xlane.f32.xlu0 %v1745_v22  ;;  %2233 = vmatpush.bf16.msrb.mxu3 %v3000_v18  ;;  %v3005_v18 = vld [vmem:[%s4082_s21 + $0x48] sm:$0xff] }
 0x796   : > { %1929 = vmatpush.bf16.msrb.mxu2 %v2816_v23 }
 0x7fe   : > { %v1749_v28 = vpop.xlane.xlu0 %1748 }
 0x7ff   : > { %v1759_v29 = vmul.f32 %v4290_v49, %v1749_v28 }
 0x801   : > { %v4293_v31 = vsub.f32 %v1744_v17, %v1759_v29 }
 0x803   : > { %v1763_v50 = vmul.f32 %v4293_v31, %v4293_v31 }
 0x805   : > { %1765 = vadd.xlane.f32.xlu1 %v1763_v50 }
 0x806   : > { %v1751_v32 = vpop.xlane.xlu0 %1750 }
 0x807   : > { %v1760_v8 = vmul.f32 %v4290_v49, %v1751_v32 }
 0x809   : > { %v4298_v33 = vsub.f32 %v1745_v22, %v1760_v8  ;;  %v2812_v22 = vor.u32 %v2981_v16, %v2811_v60 }
 0x80b   : > { %v1764_v34 = vmul.f32 %v4298_v33, %v4298_v33  ;;  %1915 = vmatpush.bf16.msrb.mxu1 %v2812_v22  ;;  %v3009_v22 = vld [vmem:[%s4082_s21 + $0x68] sm:$0xff] }
 0x80c   : > { %2246 = vmatpush.bf16.msra.mxu0 %v3009_v22 }
 0x80d   : > { %1767 = vadd.xlane.f32.xlu2 %v1764_v34 }
 0x878   : > { %v1766_v17 = vpop.xlane.xlu1 %1765 }
 0x879   : > { %v1769_v21 = vmul.f32 %v1766_v17, %v4290_v49 }
 0x87b   : > { %v1771_v24 = vadd.f32 1e-12, %v1769_v21 }
 0x87d   : > { %3218 = vrsqrt.f32 %v1771_v24  ;;  %vm1779_vm5 = vweird.f32 %v1771_v24 }
 0x880   : > { %v1768_v25 = vpop.xlane.xlu2 %1767 }
 0x881   : > { %v1770_v47 = vmul.f32 %v1768_v25, %v4290_v49 }
 0x883   : > { %v3219_v27 = vpop.eup %3218  ;;  %v1772_v38 = vadd.f32 1e-12, %v1770_v47 }
 0x884   : > { %v1774_v28 = vmul.f32 %v3219_v27, %v1771_v24  ;;  %vm1780_vm4 = vweird.f32 %v3219_v27  ;;  %v2999_v24 = vld [vmem:[%s4082_s21 + $0x18] sm:$0xff] }
 0x885   : > { %3220 = vrsqrt.f32 %v1772_v38  ;;  %vm1781_vm6 = vmor %vm1779_vm5, %vm1780_vm4  ;;  %vm1789_vm8 = vweird.f32 %v1772_v38  ;;  %2234 = vmatpush.bf16.msrb.mxu3 %v2999_v24 }
 0x886   : > { %v1775_v29 = vmul.f32 %v3219_v27, %v1774_v28 }
 0x888   : > { %v1776_v50 = vmul.f32 0.5, %v1775_v29 }
 0x88a   : > { %v1777_v32 = vsub.f32 1.5, %v1776_v50  ;;  %v3008_v50 = vld [vmem:[%s4082_s21 + $0x60] sm:$0xff] }
 0x88b   : > { %v3221_v8 = vpop.eup %3220  ;;  %2247 = vmatpush.bf16.msra.mxu0 %v3008_v50  ;;  %v3004_v50 = vld [vmem:[%s4082_s21 + $0x40] sm:$0xff] }
 0x88c   : > { %v1778_v34 = vmul.f32 %v3219_v27, %v1777_v32  ;;  %v1784_v35 = vmul.f32 %v3221_v8, %v1772_v38  ;;  %vm1790_vm7 = vweird.f32 %v3221_v8 }
 0x88d   : > { %vm1791_vm9 = vmor %vm1789_vm8, %vm1790_vm7 }
 0x88e   : > { %v1785_v36 = vmul.f32 %v3221_v8, %v1784_v35  ;;  %v1782_v37 = vsel %vm1781_vm6, %v3219_v27, %v1778_v34  ;;  %v2998_v35 = vld [vmem:[%s4082_s21 + $0x10] sm:$0xff] }
 0x88f   : > { %v1793_v41 = vmul.f32 %v1782_v37, %v4293_v31  ;;  %2235 = vmatpush.bf16.msrb.mxu3 %v2998_v35 }
 0x890   : > { %v1786_v39 = vmul.f32 0.5, %v1785_v36 }
 0x891   : > { %v1798_v46 = vmul.f32 %v3179_v42, %v1793_v41  ;;  %v3007_v41 = vld [vmem:[%s4082_s21 + $0x58] sm:$0xff] }
 0x892   : > { %v1787_v40 = vsub.f32 1.5, %v1786_v39  ;;  %2248 = vmatpush.bf16.msra.mxu0 %v3007_v41 }
 0x893   : > { %v4342_v52 = vadd.f32 %v3180_v48, %v1798_v46 }
 0x894   : > { %v1788_v43 = vmul.f32 %v3221_v8, %v1787_v40 }
 0x896   : > { %v1792_v44 = vsel %vm1791_vm9, %v3221_v8, %v1788_v43 }
 0x897   : > { %v1794_v45 = vmul.f32 %v1792_v44, %v4298_v33 }
 0x899   : > { %v1799_v51 = vmul.f32 %v3179_v42, %v1794_v45 }
 0x89b   : > { %v4344_v54 = vadd.f32 %v3180_v48, %v1799_v51  ;;  %v2997_v51 = vld [vmem:[%s4082_s21 + $0x8] sm:$0xff] }
 0x89c   : > { %2236 = vmatpush.bf16.msrb.mxu3 %v2997_v51 }
 0x89d   : > { %v1805_v31 = vpack.c.bf16 %v4344_v54, %v4342_v52 }
 0x89f   : > { %1916 = vmatmul.bf16.vlgmr.msrb.gmra.mxu1 %v1805_v31  ;;  %1930 = vmatmul.bf16.vlgmr.msrb.gmra.mxu2 %v1805_v31 }
 0x8a0   : > { %2237 = vmatpush.bf16.msrb.mxu3 %v2996_v6 }
 0x91c   : > { %v1917_v57 = vpop.f32.mrf.mxu1 }
 0x91d   : > { %v4349_v58 = vadd.f32 %v1917_v57, %v1824_v13 }
 0x91f   : > { %v4352_v33 = vmul.f32 0.70710677, %v4349_v58 }
 0x921   : > { %v1952_v55 = vand.u32 2147483647, %v4352_v33 }
 0x922   : > { %v1931_v62 = vpop.f32.mrf.mxu2 }
 0x923   : > { %v1956_v63 = vmul.f32 0.3275911, %v1952_v55  ;;  %v4356_v0 = vadd.f32 %v1931_v62, %v1825_v59  ;;  %v2060_v27 = vsub.f32 0.0, %v1952_v55 }
 0x924   : > { %v1919_v1 = vpop.f32.mrf.mxu1 }
 0x925   : > { %v1960_v2 = vadd.f32 1.0, %v1956_v63  ;;  %v4359_v3 = vmul.f32 0.70710677, %v4356_v0  ;;  %v4362_v30 = vadd.f32 %v1919_v1, %v1824_v13  ;;  %v2064_v39 = vmul.f32 %v2060_v27, %v1952_v55  ;;  %v3006_v55 = vld [vmem:[%s4082_s21 + $0x50] sm:$0xff] }
 0x926   : > { %2249 = vmatpush.bf16.msra.mxu0 %v3006_v55 }
 0x927   : > { %3222 = vrcp.f32 %v1960_v2  ;;  %v4366_v53 = vand.u32 2147483647, %v4359_v3  ;;  %v4369_v5 = vmul.f32 0.70710677, %v4362_v30  ;;  %v1975_v23 = vand.u32 2147483648, %v1960_v2 }
 0x928   : > { %v1973_v47 = vand.u32 2147483647, %v1960_v2  ;;  %vm1969_vm11 = vweird.f32 %v1960_v2  ;;  %v2068_v13 = vmul.f32 1.442695, %v2064_v39 }
 0x929   : > { %v1957_v26 = vmul.f32 0.3275911, %v4366_v53  ;;  %v4374_v9 = vand.u32 2147483647, %v4369_v5  ;;  %v1976_v32 = vor.u32 1.1754944e-38, %v1975_v23  ;;  %v2061_v56 = vsub.f32 0.0, %v4366_v53 }
 0x92a   : > { %v1933_v7 = vpop.f32.mrf.mxu2  ;;  %vm1974_vm13 = vcmp.eq.f32.partialorder %v1973_v47, 8.507059e+37  ;;  %2250 = vmatpush.bf16.msra.mxu0 %v3005_v18 }
 0x92b   : > { %v4376_v10 = vadd.f32 %v1933_v7, %v1825_v59  ;;  %v4379_v14 = vadd.f32 1.0, %v1957_v26  ;;  %v1958_v60 = vmul.f32 0.3275911, %v4374_v9  ;;  %v2065_v11 = vmul.f32 %v2061_v56, %v4366_v53 }
 0x92d   : > { %v3223_v15 = vpop.eup %3222  ;;  %v4383_v16 = vmul.f32 0.70710677, %v4376_v10  ;;  %3224 = vrcp.f32 %v4379_v14  ;;  %v4387_v19 = vadd.f32 1.0, %v1958_v60  ;;  %v1990_v44 = vand.u32 2147483648, %v4379_v14 }
 0x92e   : > { %v1965_v17 = vmul.f32 %v3223_v15, %v1960_v2  ;;  %vm1970_vm10 = vweird.f32 %v3223_v15  ;;  %v1988_v46 = vand.u32 2147483647, %v4379_v14  ;;  %vm1984_vm15 = vweird.f32 %v4379_v14  ;;  %2251 = vmatpush.bf16.msra.mxu0 %v3004_v50 }
 0x92f   : > { %v4390_v21 = vand.u32 2147483647, %v4383_v16  ;;  %3226 = vrcp.f32 %v4387_v19  ;;  %vm1971_vm12 = vmor %vm1969_vm11, %vm1970_vm10  ;;  %v1991_v62 = vor.u32 1.1754944e-38, %v1990_v44  ;;  %v2003_v63 = vand.u32 2147483647, %v4387_v19 }
 0x930   : > { %v1966_v20 = vsub.f32 1.0, %v1965_v17  ;;  %v2005_v1 = vand.u32 2147483648, %v4387_v19  ;;  %vm1989_vm1 = vcmp.eq.f32.partialorder %v1988_v46, 8.507059e+37  ;;  %vm1999_vm3 = vweird.f32 %v4387_v19 }
 0x931   : > { %v1959_v38 = vmul.f32 0.3275911, %v4390_v21  ;;  %v2062_v17 = vsub.f32 0.0, %v4374_v9  ;;  %vm2004_vm5 = vcmp.eq.f32.partialorder %v2003_v63, 8.507059e+37  ;;  %vm1944_vm10 = vcmp.ge.f32.partialorder %v4352_v33, 0.0 }
 0x932   : > { %v1967_v25 = vmul.f32 %v3223_v15, %v1966_v20  ;;  %v2006_v22 = vor.u32 1.1754944e-38, %v2005_v1  ;;  %vm1946_vm11 = vcmp.ge.f32.partialorder %v4369_v5, 0.0  ;;  %v1938_v5 = vmul.f32 0.5, %v4362_v30  ;;  %v3181_v30 = vld [vmem:[%s875_s28] ss:$0 sm:$0xff] }
 0x933   : > { %v3225_v28 = vpop.eup %3224  ;;  %v4398_v34 = vadd.f32 1.0, %v1959_v38 }
 0x934   : > { %v1968_v29 = vadd.f32 %v3223_v15, %v1967_v25  ;;  %v1980_v8 = vmul.f32 %v3225_v28, %v4379_v14  ;;  %vm1985_vm14 = vweird.f32 %v3225_v28 }
 0x935   : > { %3228 = vrcp.f32 %v4398_v34  ;;  %v3227_v42 = vpop.eup %3226  ;;  %vm1986_vm0 = vmor %vm1984_vm15, %vm1985_vm14  ;;  %v2018_v25 = vand.u32 2147483647, %v4398_v34  ;;  %v2020_v47 = vand.u32 2147483648, %v4398_v34  ;;  %vm2014_vm7 = vweird.f32 %v4398_v34 }
 0x936   : > { %v1972_v36 = vsel %vm1971_vm12, %v3223_v15, %v1968_v29  ;;  %v1981_v40 = vsub.f32 1.0, %v1980_v8  ;;  %v1995_v48 = vmul.f32 %v3227_v42, %v4387_v19  ;;  %vm2000_vm2 = vweird.f32 %v3227_v42 }
 0x937   : > { %v4401_v37 = vsel %vm1974_vm13, %v1976_v32, %v1972_v36  ;;  %vm2001_vm4 = vmor %vm1999_vm3, %vm2000_vm2  ;;  %v2070_v8 = vmul.f32 1.442695, %v2065_v11  ;;  %3230 = vpow2.f32 %v2068_v13  ;;  %vm2019_vm9 = vcmp.eq.f32.partialorder %v2018_v25, 8.507059e+37 }
 0x938   : > { %v2024_v43 = vmul.f32 1.0614054, %v4401_v37  ;;  %v1982_v45 = vmul.f32 %v3225_v28, %v1981_v40  ;;  %v1996_v59 = vsub.f32 1.0, %v1995_v48  ;;  %v2021_v40 = vor.u32 1.1754944e-38, %v2020_v47 }
 0x939   : > { %v2063_v48 = vsub.f32 0.0, %v4390_v21  ;;  %3232 = vpow2.f32 %v2070_v8  ;;  %vm1945_vm12 = vcmp.ge.f32.partialorder %v4359_v3, 0.0  ;;  %vm1947_vm13 = vcmp.ge.f32.partialorder %v4383_v16, 0.0 }
 0x93a   : > { %v2028_v31 = vadd.f32 -1.4531521, %v2024_v43  ;;  %v1983_v57 = vadd.f32 %v3225_v28, %v1982_v45  ;;  %v1997_v4 = vmul.f32 %v3227_v42, %v1996_v59  ;;  %v1936_v8 = vmul.f32 0.5, %v4349_v58 }
 0x93b   : > { %v3229_v2 = vpop.eup %3228 }
 0x93c   : > { %v2032_v61 = vmul.f32 %v2028_v31, %v4401_v37  ;;  %v1987_v12 = vsel %vm1986_vm0, %v3225_v28, %v1983_v57  ;;  %v2010_v14 = vmul.f32 %v3229_v2, %v4398_v34  ;;  %v1998_v60 = vadd.f32 %v3227_v42, %v1997_v4 }
 0x93d   : > { %v1992_v7 = vsel %vm1989_vm1, %v1991_v62, %v1987_v12  ;;  %vm2015_vm6 = vweird.f32 %v3229_v2  ;;  %v3231_v59 = vpop.eup %3230 }
 0x93e   : > { %v2036_v26 = vadd.f32 1.4214138, %v2032_v61  ;;  %v2025_v15 = vmul.f32 1.0614054, %v1992_v7  ;;  %v2011_v23 = vsub.f32 1.0, %v2010_v14  ;;  %v2002_v53 = vsel %vm2001_vm4, %v3227_v42, %v1998_v60  ;;  %vm2016_vm8 = vmor %vm2014_vm7, %vm2015_vm6 }
 0x93f   : > { %v2007_v38 = vsel %vm2004_vm5, %v2006_v22, %v2002_v53  ;;  %v2066_v42 = vmul.f32 %v2062_v17, %v4374_v9  ;;  %v2067_v9 = vmul.f32 %v2063_v48, %v4390_v21  ;;  %v3233_v11 = vpop.eup %3232 }
 0x940   : > { %v2040_v20 = vmul.f32 %v2036_v26, %v4401_v37  ;;  %v2029_v24 = vadd.f32 -1.4531521, %v2025_v15  ;;  %v2012_v19 = vmul.f32 %v3229_v2, %v2011_v23  ;;  %v2026_v29 = vmul.f32 1.0614054, %v2007_v38 }
 0x941   : > { %v2072_v13 = vmul.f32 1.442695, %v2066_v42  ;;  %v2074_v26 = vmul.f32 1.442695, %v2067_v9 }
 0x942   : > { %v2044_v27 = vadd.f32 -0.28449672, %v2040_v20  ;;  %v2033_v28 = vmul.f32 %v2029_v24, %v1992_v7  ;;  %v2013_v35 = vadd.f32 %v3229_v2, %v2012_v19  ;;  %v2030_v39 = vadd.f32 -1.4531521, %v2026_v29 }
 0x943   : > { %3234 = vpow2.f32 %v2072_v13  ;;  %v3666_v20 = vmov -1.0  }
 0x944   : > { %v2048_v32 = vmul.f32 %v2044_v27, %v4401_v37  ;;  %v2037_v36 = vadd.f32 1.4214138, %v2033_v28  ;;  %v2017_v43 = vsel %vm2016_vm8, %v3229_v2, %v2013_v35  ;;  %v2034_v45 = vmul.f32 %v2030_v39, %v2007_v38 }
 0x945   : > { %v2022_v46 = vsel %vm2019_vm9, %v2021_v40, %v2017_v43  ;;  %3236 = vpow2.f32 %v2074_v26  ;;  %v1948_v22 = vsel %vm1944_vm10, 1.0, %v3666_v20  ;;  %v1950_v33 = vsel %vm1946_vm11, 1.0, %v3666_v20 }
 0x946   : > { %v2052_v41 = vadd.f32 0.2548296, %v2048_v32  ;;  %v2041_v44 = vmul.f32 %v2037_v36, %v1992_v7  ;;  %v2027_v51 = vmul.f32 1.0614054, %v2022_v46  ;;  %v2038_v56 = vadd.f32 1.4214138, %v2034_v45 }
 0x947   : > { %v1949_v29 = vsel %vm1945_vm12, 1.0, %v3666_v20  ;;  %v1951_v40 = vsel %vm1947_vm13, 1.0, %v3666_v20  ;;  %v1939_v45 = vmul.f32 0.5, %v4376_v10 }
 0x948   : > { %v2056_v31 = vmul.f32 %v2052_v41, %v4401_v37  ;;  %v2045_v34 = vadd.f32 -0.28449672, %v2041_v44  ;;  %v2031_v57 = vadd.f32 -1.4531521, %v2027_v51  ;;  %v2042_v61 = vmul.f32 %v2038_v56, %v2007_v38 }
 0x949   : > { %v3235_v21 = vpop.eup %3234  ;;  %v1937_v44 = vmul.f32 0.5, %v4356_v0 }
 0x94a   : > { %v2049_v55 = vmul.f32 %v2045_v34, %v1992_v7  ;;  %v2035_v62 = vmul.f32 %v2031_v57, %v2022_v46  ;;  %v2076_v63 = vmul.f32 %v3231_v59, %v2056_v31  ;;  %v2046_v2 = vadd.f32 -0.28449672, %v2042_v61 }
 0x94b   : > { %v3237_v19 = vpop.eup %3236 }
 0x94c   : > { %v2053_v1 = vadd.f32 0.2548296, %v2049_v55  ;;  %v2039_v12 = vadd.f32 1.4214138, %v2035_v62  ;;  %v2050_v6 = vmul.f32 %v2046_v2, %v2007_v38  ;;  %v2080_v14 = vsub.f32 1.0, %v2076_v63 }
 0x94e   : > { %v2057_v4 = vmul.f32 %v2053_v1, %v1992_v7  ;;  %v2043_v37 = vmul.f32 %v2039_v12, %v2022_v46  ;;  %v2054_v15 = vadd.f32 0.2548296, %v2050_v6  ;;  %v2084_v24 = vmul.f32 %v2080_v14, %v1948_v22 }
 0x950   : > { %v2077_v60 = vmul.f32 %v3233_v11, %v2057_v4  ;;  %v2047_v17 = vadd.f32 -0.28449672, %v2043_v37  ;;  %v2058_v18 = vmul.f32 %v2054_v15, %v2007_v38  ;;  %v2088_v28 = vadd.f32 1.0, %v2084_v24 }
 0x952   : > { %v2051_v23 = vmul.f32 %v2047_v17, %v2022_v46  ;;  %v2078_v7 = vmul.f32 %v3235_v21, %v2058_v18  ;;  %v2081_v53 = vsub.f32 1.0, %v2077_v60  ;;  %v2092_v36 = vmul.f32 %v2088_v28, %v1936_v8 }
 0x954   : > { %v2055_v25 = vadd.f32 0.2548296, %v2051_v23  ;;  %v2082_v47 = vsub.f32 1.0, %v2078_v7  ;;  %v2085_v50 = vmul.f32 %v2081_v53, %v1949_v29  ;;  %v3182_v23 = vld [vmem:[%s878_s2] ss:$0 sm:$0xff]  ;;  %s4638_s2 = sld [smem:[#allocation31_spill]] }
 0x955   : > { %v3183_v7 = vld [vmem:[%s881_s7] ss:$0 sm:$0xff] }
 0x956   : > { %v2059_v27 = vmul.f32 %v2055_v25, %v2022_v46  ;;  %v2086_v38 = vmul.f32 %v2082_v47, %v1950_v33  ;;  %v2089_v41 = vadd.f32 1.0, %v2085_v50 }
 0x958   : > { %v2079_v32 = vmul.f32 %v3237_v19, %v2059_v27  ;;  %v2090_v35 = vadd.f32 1.0, %v2086_v38  ;;  %v2093_v16 = vmul.f32 %v2089_v41, %v1937_v44 }
 0x95a   : > { %v2083_v3 = vsub.f32 1.0, %v2079_v32  ;;  %v2094_v39 = vmul.f32 %v2090_v35, %v1938_v5  ;;  %p2937_p9 = scmp.ne.s32.totalorder %s4638_s2, 1 }
 0x95c   : > { %v2087_v42 = vmul.f32 %v2083_v3, %v1951_v40  ;;  %v2096_v43 = vpack.c.bf16 %v2094_v39, %v2092_v36 }
 0x95e   : > { %v2091_v46 = vadd.f32 1.0, %v2087_v42  ;;  %2238 = vmatmul.bf16.vlgmr.msrb.gmra.mxu3 %v2096_v43 }
 0x960   : > { %v2095_v48 = vmul.f32 %v2091_v46, %v1939_v45 }
 0x962   : > { %v2097_v58 = vpack.c.bf16 %v2095_v48, %v2093_v16 }
 0x964   : > { %2252 = vmatmul.bf16.vlgmr.msra.gmra.mxu0 %v2097_v58 }
 0x9e1   : > { %v2239_v51 = vpop.f32.mrf.mxu3  ;;  %v2253_v31 = vpop.f32.mrf.mxu0 }
 0x9e2   : > { %v2240_v34 = vadd.f32 %v3181_v30, %v2239_v51 }
 0x9e4   : > { %v2254_v56 = vadd.f32 %v2253_v31, %v2240_v34 }
 0x9e6   : > { %v2258_v13 = vadd.f32 %v2254_v56, %v4342_v52 }
 0x9e8   : > { %2262 = vadd.xlane.f32.xlu0 %v2258_v13 }
 0x9e9   : > { %v2241_v0 = vpop.f32.mrf.mxu3  ;;  %v2255_v57 = vpop.f32.mrf.mxu0 }
 0x9ea   : > { %v2242_v10 = vadd.f32 %v3181_v30, %v2241_v0 }
 0x9ec   : > { %v2256_v59 = vadd.f32 %v2255_v57, %v2242_v10 }
 0x9ee   : > { %v2259_v55 = vadd.f32 %v2256_v59, %v4344_v54 }
 0x9f0   : > { %2264 = vadd.xlane.f32.xlu0 %v2259_v55 }
 0xa5b   : > { %v2263_v61 = vpop.xlane.xlu0 %2262 }
 0xa5c   : > { %v2266_v9 = vmul.f32 %v2263_v61, %v4290_v49 }
 0xa5e   : > { %v2268_v62 = vsub.f32 %v2258_v13, %v2266_v9 }
 0xa60   : > { %v2270_v63 = vmul.f32 %v2268_v62, %v2268_v62 }
 0xa62   : > { %2272 = vadd.xlane.f32.xlu0 %v2270_v63 }
 0xa63   : > { %v2265_v1 = vpop.xlane.xlu0 %2264 }
 0xa64   : > { %v2267_v2 = vmul.f32 %v2265_v1, %v4290_v49 }
 0xa66   : > { %v2269_v12 = vsub.f32 %v2259_v55, %v2267_v2 }
 0xa68   : > { %v2271_v4 = vmul.f32 %v2269_v12, %v2269_v12 }
 0xa6a   : > { %2274 = vadd.xlane.f32.xlu0 %v2271_v4 }
 0xad5   : > { %v2273_v52 = vpop.xlane.xlu0 %2272 }
 0xad6   : > { %v2276_v6 = vmul.f32 %v2273_v52, %v4290_v49 }
 0xad8   : > { %v2278_v26 = vadd.f32 1e-12, %v2276_v6 }
 0xada   : > { %3238 = vrsqrt.f32 %v2278_v26  ;;  %vm2286_vm15 = vweird.f32 %v2278_v26 }
 0xadd   : > { %v2275_v54 = vpop.xlane.xlu0 %2274 }
 0xade   : > { %v2277_v37 = vmul.f32 %v2275_v54, %v4290_v49 }
 0xae0   : > { %v3239_v11 = vpop.eup %3238  ;;  %v2279_v14 = vadd.f32 1e-12, %v2277_v37 }
 0xae1   : > { %v2281_v15 = vmul.f32 %v3239_v11, %v2278_v26  ;;  %vm2287_vm14 = vweird.f32 %v3239_v11 }
 0xae2   : > { %3240 = vrsqrt.f32 %v2279_v14  ;;  %vm2288_vm0 = vmor %vm2286_vm15, %vm2287_vm14  ;;  %vm2296_vm2 = vweird.f32 %v2279_v14 }
 0xae3   : > { %v2282_v60 = vmul.f32 %v3239_v11, %v2281_v15 }
 0xae5   : > { %v2283_v17 = vmul.f32 0.5, %v2282_v60 }
 0xae7   : > { %v2284_v18 = vsub.f32 1.5, %v2283_v17 }
 0xae8   : > { %v3241_v21 = vpop.eup %3240 }
 0xae9   : > { %v2285_v20 = vmul.f32 %v3239_v11, %v2284_v18  ;;  %v2291_v22 = vmul.f32 %v3241_v21, %v2279_v14  ;;  %vm2297_vm1 = vweird.f32 %v3241_v21 }
 0xaea   : > { %vm2298_vm3 = vmor %vm2296_vm2, %vm2297_vm1 }
 0xaeb   : > { %v2289_v49 = vsel %vm2288_vm0, %v3239_v11, %v2285_v20  ;;  %v2292_v24 = vmul.f32 %v3241_v21, %v2291_v22 }
 0xaec   : > { %v2300_v53 = vmul.f32 %v2289_v49, %v2268_v62 }
 0xaed   : > { %v2293_v25 = vmul.f32 0.5, %v2292_v24 }
 0xaee   : > { %v2305_v47 = vmul.f32 %v3182_v23, %v2300_v53 }
 0xaef   : > { %v2294_v33 = vsub.f32 1.5, %v2293_v25 }
 0xaf0   : > { %v2310_v27 = vadd.f32 %v3183_v7, %v2305_v47 }
 0xaf1   : > { %v2295_v19 = vmul.f32 %v3241_v21, %v2294_v33 }
 0xaf2   : > { %2312 = vst [vmem:[#allocation2] sm:$0xff] %v2310_v27 }
 0xaf3   : > { %v2299_v28 = vsel %vm2298_vm3, %v3241_v21, %v2295_v19 }
 0xaf4   : > { %v2301_v29 = vmul.f32 %v2299_v28, %v2269_v12 }
 0xaf6   : > { %v2306_v38 = vmul.f32 %v3182_v23, %v2301_v29  ;;  %2317 = sbr.rel (%p2937_p9) target bundleno = 2813 (0xafd), region = 120 }
 0xaf8   : > { %v2311_v50 = vadd.f32 %v3183_v7, %v2306_v38 }
 0xafa   : > { %2313 = vst [vmem:[#allocation2 + $0x8] sm:$0xff] %v2311_v50 }
 0xafb   : > { %2318 = vst [vmem:[%s4086_s27] sm:$0xff] %v2310_v27 }
 0xafc   : > { %2319 = vst [vmem:[%s4086_s27 + $0x8] sm:$0xff] %v2311_v50 }
 0xafd PF: > { %s4639_s7 = sld [smem:[#allocation32_spill]]  ;;  %s2333_s22 = sshll.u32 %s4086_s27, 4  ;;  %s2334_s22 = int_to_ptr.vmem [resolvable:$true] %s2333_s22 }
 0xafe   : > { %s4641_s13 = sld [smem:[#allocation58_spill]]  ;;  %s2321_s29 = scalar_lea.sflag [#allocation5], %s4003_s10 }
 0xb03   : > { %s3012_s16 = sshll.u32 %s4639_s7, 4 }
 0xb04   : > { %s2332_s30 = scalar_lea.hbm %s4641_s13, %s3012_s16  ;;  %s3532_s19 = scalar_lea.hbm %s4641_s13, 32 }
 0xb05   : > { %s2335_s11 = sshll.u32 %s2332_s30, 4  ;;  %s2336_s11 = int_to_ptr.hbm [resolvable:$true] %s2335_s11 }
 0xb06   : > { %s3526_s0 = sshra.s32 %s2336_s11, 4  ;;  %s3527_s0 = int_to_ptr.hbm [resolvable:$true] %s3526_s0 }
 0xb07   : > { %s3528_s4 = scalar_lea.hbm %s3527_s0, 16  ;;  %p3533_p7 = scmp.lt.s32.totalorder %s3527_s0, %s4641_s13 }
 0xb08   : > { %p3529_p13 = scmp.ne.s32.totalorder %s3527_s0, %s3528_s4  ;;  %p3534_p8 = scmp.lt.s32.totalorder %s3532_s19, %s3528_s4 }
 0xb0a   : > { %p3530_p1 = pnand %p3529_p13, %p3836_p10  ;;  %p3535_p12 = por %p3534_p8, %p3533_p7 }
 0xb0c   : > { %p3531_p5 = pneg %p3530_p1 }
 0xb0e   : > { %p3536_p3 = pnand %p3535_p12, %p3531_p5 }
 0xb10   : > { %3539 = shalt.err (!%p3536_p3)
}
 0xb11   : > { %s3667_s10 = smov 128   ;;  %s3668_s27 = smov 8  }
 0xb12   : > { %3041 = dma.vmem_to_hbm [thread:$0]  (%p3836_p10), %s2334_s22, 256, %s2336_s11, %s2321_s29, %s3667_s10, %s3667_s10, %s3668_s27  }
 0xb13 PF: > { %s4642_s20 = sld [smem:[#allocation35_spill]] }
 0xb14   : > { %s4643_s6 = sld [smem:[#allocation28_spill]] }
 0xb19   : > { %p3076_p4 = scmp.ge.s32.totalorder %s4642_s20, 2 }
 0xb1a   : > { %s2350_s26 = sand.u32 1, %s4643_s6  }
 0xb1b   : > { %p3072_p0 = pnand %p3076_p4, %p3842_p11  ;;  %s2351_s8 = scalar_lea.sflag [#allocation5], %s2350_s26 }
 0xb1d   : > { %p3073_p2 = pneg %p3072_p0 }
 0xb1f   : > { %3609 = dma.done.wait (%p3073_p2), %s2351_s8, 256  }
 0xb20   : > { %3611 = vsyncadd (%p3073_p2), %s2351_s8, 4294967040  ;;  %s42_s23 = sadd.s32 1, %s4642_s20   ;;  %s4645_s29 = sld [smem:[#allocation26_spill]] }
 0xb21   : > { %p39_p6 = scmp.ge.s32.totalorder %s42_s23, 6   ;;  %s4646_s30 = sld [smem:[#allocation27_spill]] }
 0xb22   : > { %s4647_s15 = sld [smem:[#allocation43_spill]] }
 0xb23   : > { %s4648_s16 = sld [smem:[#allocation29_spill]] }
 0xb24   : > { %s4649_s17 = sld [smem:[#allocation30_spill]] }
 0xb25   : > { %s4650_s18 = sld [smem:[#allocation40_spill]]  ;;  %41 = sbr.rel (!%p39_p6) target bundleno = 33 (0x21), region = 240 }
 0xb26   : > { %s4651_s19 = sld [smem:[#allocation33_spill]] }
 0xb27   : > { %s4652_s20 = sld [smem:[#allocation34_spill]] }
 0xb28   : > { %s4653_s21 = sld [smem:[#allocation41_spill]] }
 0xb29   : > { %s4654_s22 = sld [smem:[#allocation36_spill]] }
 0xb2a   :  { %2357 = vsyncpa [#allocation4], 1 }
 0xb2b   :  { %2359 = vsyncpa [#allocation4 + $0x1], 1 }
 0xb2c   :  { %2360 = vsyncpa [#allocation7], 1 }
 0xb2d   :  { %2362 = vsyncpa [#allocation7 + $0x1], 1 }
 0xb2e   :  { %2363 = vsyncpa [#allocation10], 1 }
 0xb2f   :  { %2365 = vsyncpa [#allocation10 + $0x1], 1 }
 0xb30   :  { %2366 = vsyncpa [#allocation13], 1 }
 0xb31   :  { %2368 = vsyncpa [#allocation13 + $0x1], 1 }
 0xb32   :  { %2369 = vsyncpa [#allocation16], 1 }
 0xb33   :  { %2371 = vsyncpa [#allocation16 + $0x1], 1 }
 0xb34   :  { %2372 = vsyncpa [#allocation5], 1 }
 0xb35   :  { %2374 = vsyncpa [#allocation5 + $0x1], 1 }

</bundles_post_ra>
